<compile_context>
chip_gen: v7x
topology: tpu7x:2x2x1
jax: 0.10.0
libtpu: 0.0.40
codegen_flags: <defaults>
</compile_context>

<pallas_src>
import functools

import jax
import jax.numpy as jnp
from jax import lax, random
from jax.experimental import pallas as pl
from jax.experimental.pallas import tpu as pltpu

EPS = 1e-5            # BatchNorm2d default eps
NEG = float("-inf")   # maxpool padding value


# ---------------------------------------------------------------------------
# Fused DownBlock kernel (one grid step == one batch image)
# ---------------------------------------------------------------------------
def _downblock_kernel(
    x_ref,                       # (1, Cin, H*W)   f32
    resw_ref, resb_ref,          # (Cout, Cin) bf16, (Cout, 1) f32
    w11_ref, s11_ref, t11_ref,   # block1.cb1: (Cout, 9*Cin) bf16, (Cout,1), (Cout,1)
    w12_ref, s12_ref, t12_ref,   # block1.cb2
    w21_ref, s21_ref, t21_ref,   # block2.cb1
    w22_ref, s22_ref, t22_ref,   # block2.cb2
    sel_ref,                     # (H*W, Ho*Wo) f32 0/1 stride-2 selection matrix
    h1_ref, h2_ref, pool_ref,    # outputs
    pad_ref, col_ref,            # VMEM scratch: (Cmax, L) f32, (9*Cmax, H*W) f32
    *, H, W, Cin, Cout, OFF):
  HW = H * W

  # Lane masks for the horizontal (width) boundary of a 3x3 window.
  w_idx = lax.broadcasted_iota(jnp.int32, (1, HW), 1) % W
  not_left = w_idx != 0           # kx == 0 tap invalid where w == 0
  not_right = w_idx != (W - 1)    # kx == 2 tap invalid where w == W - 1

  def taps(cin, fill):
    # 9 shifted (cin, HW) slices of the flat padded buffer, boundary-masked.
    out = []
    for ky in range(3):
      for kx in range(3):
        q0 = OFF - (W + 1) + ky * W + kx
        tap = pad_ref[0:cin, q0:q0 + HW]
        if kx == 0:
          tap = jnp.where(not_left, tap, fill)
        elif kx == 2:
          tap = jnp.where(not_right, tap, fill)
        out.append(tap)
    return out

  def conv_block(inp, cin, w_ref, scale_ref, shift_ref):
    """Conv2d(3x3, pad=1) + folded BatchNorm(eval) + SiLU. inp: (cin, HW) f32."""
    pad_ref[0:cin, OFF:OFF + HW] = inp
    for t, tap in enumerate(taps(cin, 0.0)):
      col_ref[t * cin:(t + 1) * cin, :] = tap          # im2col rows for tap t
    patches = col_ref[0:9 * cin, :].astype(jnp.bfloat16)
    y = jnp.dot(w_ref[...], patches,                   # single MXU matmul, K = 9*cin
                preferred_element_type=jnp.float32)
    y = y * scale_ref[...] + shift_ref[...]            # conv bias + BN(eval) folded
    return y * jax.nn.sigmoid(y)                       # SiLU; Dropout = identity (eval)

  # Zero the flat padded buffer once; conv_block only rewrites the data region.
  pad_ref[...] = jnp.zeros(pad_ref.shape, pad_ref.dtype)

  x = x_ref[0]                                         # (Cin, HW) f32

  # --- ResBlock 1 (Cin -> Cout): 1x1 conv residual projection ---
  r = jnp.dot(resw_ref[...], x.astype(jnp.bfloat16),
              preferred_element_type=jnp.float32) + resb_ref[...]
  a = conv_block(x, Cin, w11_ref, s11_ref, t11_ref)
  h1 = conv_block(a, Cout, w12_ref, s12_ref, t12_ref) + r
  h1_ref[0] = h1

  # --- ResBlock 2 (Cout -> Cout): identity residual ---
  b = conv_block(h1, Cout, w21_ref, s21_ref, t21_ref)
  h2 = conv_block(b, Cout, w22_ref, s22_ref, t22_ref) + h1
  h2_ref[0] = h2

  # --- MaxPool2d(kernel=3, stride=2, padding=1) fused epilogue ---
  pad_ref[...] = jnp.full(pad_ref.shape, NEG, pad_ref.dtype)
  pad_ref[0:Cout, OFF:OFF + HW] = h2
  m = jnp.full((Cout, HW), NEG, jnp.float32)
  for tap in taps(Cout, NEG):
    m = jnp.maximum(m, tap)                            # full-res 3x3 max
  # Exact stride-2 subsample: each sel column has a single 1.0, so HIGHEST keeps it
  # bit-exact (tiny matmul, negligible cost).
  pool_ref[0] = jnp.dot(m, sel_ref[...], preferred_element_type=jnp.float32,
                        precision=lax.Precision.HIGHEST)


# ---------------------------------------------------------------------------
# Wrapper: parameter folding + pallas_call
# ---------------------------------------------------------------------------
def _fold_convblock(p):
  """OIHW conv weight -> (Cout, 9*Cin) bf16 im2col matrix; fold conv bias + BN(eval)
  into per-channel (Cout, 1) scale/shift."""
  w = p["w"]                                            # (Cout, Cin, 3, 3)
  co, ci = w.shape[0], w.shape[1]
  w2 = jnp.transpose(w, (0, 2, 3, 1)).reshape(co, 9 * ci)   # col = (ky*3+kx)*Cin + ci
  inv = p["gamma"] * lax.rsqrt(p["var"] + EPS)
  scale = inv.reshape(co, 1).astype(jnp.float32)
  shift = ((p["b"] - p["mean"]) * inv + p["beta"]).reshape(co, 1).astype(jnp.float32)
  return w2.astype(jnp.bfloat16), scale, shift


def downblock_forward(x_nchw, P):
  """x_nchw: (N, Cin, H, W) f32. Returns (h1, h2, pooled) in NCHW, like PyTorch."""
  N, Cin, H, W = x_nchw.shape
  Cout = P["block1"]["cb1"]["w"].shape[0]
  HW = H * W
  Ho = (H - 1) // 2 + 1
  Wo = (W - 1) // 2 + 1
  Cmax = max(Cin, Cout)
  OFF = ((W + 1 + 127) // 128) * 128      # lane-aligned start of the data region
  L = OFF + HW + W + 2                    # flat padded buffer length

  x_flat = x_nchw.reshape(N, Cin, HW)     # free reshape, stays NCHW-ordered

  p1, p2 = P["block1"], P["block2"]
  resw = p1["res_w"][:, :, 0, 0].astype(jnp.bfloat16)        # (Cout, Cin)
  resb = p1["res_b"].reshape(Cout, 1).astype(jnp.float32)

  w11, s11, t11 = _fold_convblock(p1["cb1"])
  w12, s12, t12 = _fold_convblock(p1["cb2"])
  w21, s21, t21 = _fold_convblock(p2["cb1"])
  w22, s22, t22 = _fold_convblock(p2["cb2"])

  # 0/1 selection matrix: column (r*Wo + j) picks flat position (2r)*W + 2j.
  k = jnp.arange(Ho * Wo)
  target = 2 * (k // Wo) * W + 2 * (k % Wo)
  sel = (jnp.arange(HW)[:, None] == target[None, :]).astype(jnp.float32)

  kernel = functools.partial(_downblock_kernel, H=H, W=W, Cin=Cin, Cout=Cout, OFF=OFF)

  rep2 = lambda n: (0, 0)           # weights / scales / sel: same block every step
  per_n = lambda n: (n, 0, 0)       # activations: one batch image per grid step

  in_specs = [
      pl.BlockSpec((1, Cin, HW), per_n),
      pl.BlockSpec((Cout, Cin), rep2), pl.BlockSpec((Cout, 1), rep2),
      pl.BlockSpec((Cout, 9 * Cin), rep2), pl.BlockSpec((Cout, 1), rep2),
      pl.BlockSpec((Cout, 1), rep2),
      pl.BlockSpec((Cout, 9 * Cout), rep2), pl.BlockSpec((Cout, 1), rep2),
      pl.BlockSpec((Cout, 1), rep2),
      pl.BlockSpec((Cout, 9 * Cout), rep2), pl.BlockSpec((Cout, 1), rep2),
      pl.BlockSpec((Cout, 1), rep2),
      pl.BlockSpec((Cout, 9 * Cout), rep2), pl.BlockSpec((Cout, 1), rep2),
      pl.BlockSpec((Cout, 1), rep2),
      pl.BlockSpec((HW, Ho * Wo), rep2),
  ]
  out_specs = (
      pl.BlockSpec((1, Cout, HW), per_n),
      pl.BlockSpec((1, Cout, HW), per_n),
      pl.BlockSpec((1, Cout, Ho * Wo), per_n),
  )
  out_shape = (
      jax.ShapeDtypeStruct((N, Cout, HW), jnp.float32),
      jax.ShapeDtypeStruct((N, Cout, HW), jnp.float32),
      jax.ShapeDtypeStruct((N, Cout, Ho * Wo), jnp.float32),
  )

  h1, h2, pooled = pl.pallas_call(
      kernel,
      out_shape=out_shape,
      grid=(N,),
      in_specs=in_specs,
      out_specs=out_specs,
      scratch_shapes=[pltpu.VMEM((Cmax, L), jnp.float32),
                      pltpu.VMEM((9 * Cmax, HW), jnp.float32)],
      compiler_params=pltpu.CompilerParams(
          dimension_semantics=("parallel",)),
  )(x_flat, resw, resb,
    w11, s11, t11, w12, s12, t12,
    w21, s21, t21, w22, s22, t22, sel)

  return (h1.reshape(N, Cout, H, W),
          h2.reshape(N, Cout, H, W),
          pooled.reshape(N, Cout, Ho, Wo))


# ---------------------------------------------------------------------------
# Deterministic synthetic parameters (PyTorch shapes)
# ---------------------------------------------------------------------------
def make_convblock_params(key, cin, cout):
  ks = random.split(key, 6)
  return dict(
      w=random.normal(ks[0], (cout, cin, 3, 3), jnp.float32) * 0.15,   # OIHW
      b=random.normal(ks[1], (cout,), jnp.float32) * 0.05,
      gamma=1.0 + 0.05 * random.normal(ks[2], (cout,), jnp.float32),
      beta=0.05 * random.normal(ks[3], (cout,), jnp.float32),
      mean=0.05 * random.normal(ks[4], (cout,), jnp.float32),
      var=random.uniform(ks[5], (cout,), jnp.float32, 0.8, 1.2),
  )


# ---------------------------------------------------------------------------
# Pure-JAX reference (NCHW). Matmul operands are cast to bf16 (f32 accumulation) to
# match the kernel's MXU input precision; drop the casts to compare against strict
# PyTorch-f32 numerics (differences then are the usual ~1% bf16-MXU error).
# ---------------------------------------------------------------------------
def _ref_cb(x, p):
  y = lax.conv_general_dilated(
      x.astype(jnp.bfloat16), p["w"].astype(jnp.bfloat16), (1, 1), ((1, 1), (1, 1)),
      dimension_numbers=("NCHW", "OIHW", "NCHW"),
      preferred_element_type=jnp.float32,
      precision=lax.Precision.HIGHEST)
  y = y + p["b"][None, :, None, None]
  inv = (p["gamma"] / jnp.sqrt(p["var"] + EPS))[None, :, None, None]
  y = (y - p["mean"][None, :, None, None]) * inv + p["beta"][None, :, None, None]
  return y * jax.nn.sigmoid(y)


def _ref_res(x, rp):
  h = _ref_cb(x, rp["cb1"])
  h = _ref_cb(h, rp["cb2"])
  if "res_w" in rp:
    r = lax.conv_general_dilated(
        x.astype(jnp.bfloat16), rp["res_w"].astype(jnp.bfloat16), (1, 1),
        ((0, 0), (0, 0)),
        dimension_numbers=("NCHW", "OIHW", "NCHW"),
        preferred_element_type=jnp.float32,
        precision=lax.Precision.HIGHEST)
    r = r + rp["res_b"][None, :, None, None]
  else:
    r = x
  return h + r


def ref_downblock(x, P):
  h1 = _ref_res(x, P["block1"])
  h2 = _ref_res(h1, P["block2"])
  out = lax.reduce_window(h2, -jnp.inf, lax.max,
                          (1, 1, 3, 3), (1, 1, 2, 2),
                          [(0, 0), (0, 0), (1, 1), (1, 1)])
  return h1, h2, out


# ---------------------------------------------------------------------------
if __name__ == "__main__":
  N, Cin, Cout, H, W = 2, 4, 8, 16, 16
  key = random.PRNGKey(0)
  kb11, kb12, krw, krb, kb21, kb22, kx = random.split(key, 7)

  P = {
      "block1": {
          "cb1": make_convblock_params(kb11, Cin, Cout),
          "cb2": make_convblock_params(kb12, Cout, Cout),
          "res_w": random.normal(krw, (Cout, Cin, 1, 1), jnp.float32) * 0.15,
          "res_b": random.normal(krb, (Cout,), jnp.float32) * 0.05,
      },
      "block2": {
          "cb1": make_convblock_params(kb21, Cout, Cout),
          "cb2": make_convblock_params(kb22, Cout, Cout),
      },
  }

  x = random.normal(kx, (N, Cin, H, W), jnp.float32)   # NCHW, like PyTorch

  fwd = jax.jit(downblock_forward)
  h1, h2, out = jax.block_until_ready(fwd(x, P))
  r1, r2, rout = ref_downblock(x, P)

  assert h1.shape == (N, Cout, H, W)
  assert h2.shape == (N, Cout, H, W)
  assert out.shape == (N, Cout, H // 2, W // 2)
  for got, want in ((h1, r1), (h2, r2), (out, rout)):
    err = float(jnp.max(jnp.abs(got - want)))
    assert jnp.allclose(got, want, atol=2e-2, rtol=2e-2), err

  print("KERNEL_OK")
</pallas_src>

<mosaic_0001>
module attributes {stable_mosaic.version = 11 : i64} {
  func.func @_downblock_kernel(%arg0: i32, %arg1: memref<1x4x256xf32, #tpu.memory_space<vmem>>, %arg2: memref<8x4xbf16, #tpu.memory_space<vmem>>, %arg3: memref<8x1xf32, #tpu.memory_space<vmem>>, %arg4: memref<8x36xbf16, #tpu.memory_space<vmem>>, %arg5: memref<8x1xf32, #tpu.memory_space<vmem>>, %arg6: memref<8x1xf32, #tpu.memory_space<vmem>>, %arg7: memref<8x72xbf16, #tpu.memory_space<vmem>>, %arg8: memref<8x1xf32, #tpu.memory_space<vmem>>, %arg9: memref<8x1xf32, #tpu.memory_space<vmem>>, %arg10: memref<8x72xbf16, #tpu.memory_space<vmem>>, %arg11: memref<8x1xf32, #tpu.memory_space<vmem>>, %arg12: memref<8x1xf32, #tpu.memory_space<vmem>>, %arg13: memref<8x72xbf16, #tpu.memory_space<vmem>>, %arg14: memref<8x1xf32, #tpu.memory_space<vmem>>, %arg15: memref<8x1xf32, #tpu.memory_space<vmem>>, %arg16: memref<256x64xf32, #tpu.memory_space<vmem>>, %arg17: memref<1x8x256xf32, #tpu.memory_space<vmem>>, %arg18: memref<1x8x256xf32, #tpu.memory_space<vmem>>, %arg19: memref<1x8x64xf32, #tpu.memory_space<vmem>>, %arg20: memref<8x402xf32, #tpu.memory_space<vmem>>, %arg21: memref<72x256xf32, #tpu.memory_space<vmem>>) attributes {dimension_semantics = [#tpu.dimension_semantics<parallel>], iteration_bounds = array<i64: 2>, scalar_prefetch = 0 : i64, scratch_operands = 2 : i64, tpu.core_type = #tpu.core_type<tc>, window_params = [{transform_indices = @transform_0, window_bounds = array<i64: 1, 4, 256>}, {pipeline_mode = #tpu.pipeline_mode<synchronous>, transform_indices = @transform_1, window_bounds = array<i64: 8, 4>}, {pipeline_mode = #tpu.pipeline_mode<synchronous>, transform_indices = @transform_2, window_bounds = array<i64: 8, 1>}, {pipeline_mode = #tpu.pipeline_mode<synchronous>, transform_indices = @transform_3, window_bounds = array<i64: 8, 36>}, {pipeline_mode = #tpu.pipeline_mode<synchronous>, transform_indices = @transform_4, window_bounds = array<i64: 8, 1>}, {pipeline_mode = #tpu.pipeline_mode<synchronous>, transform_indices = @transform_5, window_bounds = array<i64: 8, 1>}, {pipeline_mode = #tpu.pipeline_mode<synchronous>, transform_indices = @transform_6, window_bounds = array<i64: 8, 72>}, {pipeline_mode = #tpu.pipeline_mode<synchronous>, transform_indices = @transform_7, window_bounds = array<i64: 8, 1>}, {pipeline_mode = #tpu.pipeline_mode<synchronous>, transform_indices = @transform_8, window_bounds = array<i64: 8, 1>}, {pipeline_mode = #tpu.pipeline_mode<synchronous>, transform_indices = @transform_9, window_bounds = array<i64: 8, 72>}, {pipeline_mode = #tpu.pipeline_mode<synchronous>, transform_indices = @transform_10, window_bounds = array<i64: 8, 1>}, {pipeline_mode = #tpu.pipeline_mode<synchronous>, transform_indices = @transform_11, window_bounds = array<i64: 8, 1>}, {pipeline_mode = #tpu.pipeline_mode<synchronous>, transform_indices = @transform_12, window_bounds = array<i64: 8, 72>}, {pipeline_mode = #tpu.pipeline_mode<synchronous>, transform_indices = @transform_13, window_bounds = array<i64: 8, 1>}, {pipeline_mode = #tpu.pipeline_mode<synchronous>, transform_indices = @transform_14, window_bounds = array<i64: 8, 1>}, {pipeline_mode = #tpu.pipeline_mode<synchronous>, transform_indices = @transform_15, window_bounds = array<i64: 256, 64>}, {transform_indices = @transform_16, window_bounds = array<i64: 1, 8, 256>}, {transform_indices = @transform_17, window_bounds = array<i64: 1, 8, 256>}, {transform_indices = @transform_18, window_bounds = array<i64: 1, 8, 64>}]} {
    %0 = tpu.iota {dimensions = array<i32: 1>} : vector<1x256xi32>
    %c16_i32 = arith.constant 16 : i32
    %c0_i32 = arith.constant 0 : i32
    %1 = arith.cmpi eq, %c16_i32, %c0_i32 : i32
    %c1_i32 = arith.constant 1 : i32
    %2 = arith.select %1, %c1_i32, %c16_i32 : i32
    %3 = vector.broadcast %2 : i32 to vector<1x256xi32>
    %4 = arith.remsi %0, %3 : vector<1x256xi32>
    %c0_i32_0 = arith.constant 0 : i32
    %5 = vector.broadcast %c0_i32_0 : i32 to vector<1x256xi32>
    %6 = arith.cmpi ne, %4, %5 : vector<1x256xi32>
    %c0_i32_1 = arith.constant 0 : i32
    %7 = vector.broadcast %c0_i32_1 : i32 to vector<1x256xi32>
    %8 = arith.cmpi slt, %4, %7 : vector<1x256xi32>
    %c0_i32_2 = arith.constant 0 : i32
    %9 = arith.cmpi slt, %2, %c0_i32_2 : i32
    %10 = vector.broadcast %9 : i1 to vector<1x256xi1>
    %11 = vector.broadcast %10 : vector<1x256xi1> to vector<1x256xi1>
    %12 = arith.xori %8, %11 : vector<1x256xi1>
    %13 = arith.andi %12, %6 : vector<1x256xi1>
    %14 = vector.broadcast %2 : i32 to vector<1x256xi32>
    %15 = arith.addi %4, %14 : vector<1x256xi32>
    %16 = arith.select %13, %15, %4 : vector<1x256xi1>, vector<1x256xi32>
    %c0_i32_3 = arith.constant 0 : i32
    %17 = vector.broadcast %c0_i32_3 : i32 to vector<1x256xi32>
    %18 = arith.cmpi ne, %16, %17 : vector<1x256xi32>
    %c15_i32 = arith.constant 15 : i32
    %19 = vector.broadcast %c15_i32 : i32 to vector<1x256xi32>
    %20 = arith.cmpi ne, %16, %19 : vector<1x256xi32>
    %cst = arith.constant 0.000000e+00 : f32
    %21 = vector.broadcast %cst : f32 to vector<8x402xf32>
    %c0 = arith.constant 0 : index
    %c0_4 = arith.constant 0 : index
    %22 = vector.load %arg20[%c0, %c0_4] : memref<8x402xf32, #tpu.memory_space<vmem>>, vector<8x402xf32>
    tpu.vector_store %arg20[%c0, %c0_4], %21 {strides = array<i32>} : memref<8x402xf32, #tpu.memory_space<vmem>>, vector<8x402xf32>,
    %c0_5 = arith.constant 0 : index
    %c0_6 = arith.constant 0 : index
    %c0_7 = arith.constant 0 : index
    %23 = vector.load %arg1[%c0_5, %c0_6, %c0_7] : memref<1x4x256xf32, #tpu.memory_space<vmem>>, vector<1x4x256xf32>
    %24 = vector.shape_cast %23 : vector<1x4x256xf32> to vector<4x256xf32>
    %c0_8 = arith.constant 0 : index
    %c0_9 = arith.constant 0 : index
    %25 = vector.load %arg2[%c0_8, %c0_9] : memref<8x4xbf16, #tpu.memory_space<vmem>>, vector<8x4xbf16>
    %26 = arith.truncf %24 : vector<4x256xf32> to vector<4x256xbf16>
    %cst_10 = arith.constant dense<0.000000e+00> : vector<8x256xf32>
    %27 = tpu.matmul %25, %26, %cst_10 {dimension_numbers = #tpu.dot_dimension_numbers<[1], [0], [0], [1], [0, 0, 1, 1], [], []>} : vector<8x4xbf16>, vector<4x256xbf16>, vector<8x256xf32> -> vector<8x256xf32>
    %c0_11 = arith.constant 0 : index
    %c0_12 = arith.constant 0 : index
    %28 = vector.load %arg3[%c0_11, %c0_12] : memref<8x1xf32, #tpu.memory_space<vmem>>, vector<8x1xf32>
    %29 = vector.broadcast %28 : vector<8x1xf32> to vector<8x256xf32>
    %30 = arith.addf %27, %29 : vector<8x256xf32>
    %c0_13 = arith.constant 0 : index
    %c128 = arith.constant 128 : index
    %31 = vector.load %arg20[%c0_13, %c128] : memref<8x402xf32, #tpu.memory_space<vmem>>, vector<4x256xf32>
    tpu.vector_store %arg20[%c0_13, %c128], %24 {strides = array<i32>} : memref<8x402xf32, #tpu.memory_space<vmem>>, vector<4x256xf32>,
    %c0_14 = arith.constant 0 : index
    %c111 = arith.constant 111 : index
    %32 = vector.load %arg20[%c0_14, %c111] : memref<8x402xf32, #tpu.memory_space<vmem>>, vector<4x256xf32>
    %cst_15 = arith.constant 0.000000e+00 : f32
    %33 = vector.shape_cast %18 : vector<1x256xi1> to vector<1x256xi1>
    %34 = vector.broadcast %33 : vector<1x256xi1> to vector<4x256xi1>
    %35 = vector.broadcast %cst_15 : f32 to vector<4x256xf32>
    %36 = arith.select %34, %32, %35 : vector<4x256xi1>, vector<4x256xf32>
    %c0_16 = arith.constant 0 : index
    %c112 = arith.constant 112 : index
    %37 = vector.load %arg20[%c0_16, %c112] : memref<8x402xf32, #tpu.memory_space<vmem>>, vector<4x256xf32>
    %c0_17 = arith.constant 0 : index
    %c113 = arith.constant 113 : index
    %38 = vector.load %arg20[%c0_17, %c113] : memref<8x402xf32, #tpu.memory_space<vmem>>, vector<4x256xf32>
    %cst_18 = arith.constant 0.000000e+00 : f32
    %39 = vector.shape_cast %20 : vector<1x256xi1> to vector<1x256xi1>
    %40 = vector.broadcast %39 : vector<1x256xi1> to vector<4x256xi1>
    %41 = vector.broadcast %cst_18 : f32 to vector<4x256xf32>
    %42 = arith.select %40, %38, %41 : vector<4x256xi1>, vector<4x256xf32>
    %c0_19 = arith.constant 0 : index
    %c127 = arith.constant 127 : index
    %43 = vector.load %arg20[%c0_19, %c127] : memref<8x402xf32, #tpu.memory_space<vmem>>, vector<4x256xf32>
    %cst_20 = arith.constant 0.000000e+00 : f32
    %44 = vector.shape_cast %18 : vector<1x256xi1> to vector<1x256xi1>
    %45 = vector.broadcast %44 : vector<1x256xi1> to vector<4x256xi1>
    %46 = vector.broadcast %cst_20 : f32 to vector<4x256xf32>
    %47 = arith.select %45, %43, %46 : vector<4x256xi1>, vector<4x256xf32>
    %c0_21 = arith.constant 0 : index
    %c128_22 = arith.constant 128 : index
    %48 = vector.load %arg20[%c0_21, %c128_22] : memref<8x402xf32, #tpu.memory_space<vmem>>, vector<4x256xf32>
    %c0_23 = arith.constant 0 : index
    %c129 = arith.constant 129 : index
    %49 = vector.load %arg20[%c0_23, %c129] : memref<8x402xf32, #tpu.memory_space<vmem>>, vector<4x256xf32>
    %cst_24 = arith.constant 0.000000e+00 : f32
    %50 = vector.shape_cast %20 : vector<1x256xi1> to vector<1x256xi1>
    %51 = vector.broadcast %50 : vector<1x256xi1> to vector<4x256xi1>
    %52 = vector.broadcast %cst_24 : f32 to vector<4x256xf32>
    %53 = arith.select %51, %49, %52 : vector<4x256xi1>, vector<4x256xf32>
    %c0_25 = arith.constant 0 : index
    %c143 = arith.constant 143 : index
    %54 = vector.load %arg20[%c0_25, %c143] : memref<8x402xf32, #tpu.memory_space<vmem>>, vector<4x256xf32>
    %cst_26 = arith.constant 0.000000e+00 : f32
    %55 = vector.shape_cast %18 : vector<1x256xi1> to vector<1x256xi1>
    %56 = vector.broadcast %55 : vector<1x256xi1> to vector<4x256xi1>
    %57 = vector.broadcast %cst_26 : f32 to vector<4x256xf32>
    %58 = arith.select %56, %54, %57 : vector<4x256xi1>, vector<4x256xf32>
    %c0_27 = arith.constant 0 : index
    %c144 = arith.constant 144 : index
    %59 = vector.load %arg20[%c0_27, %c144] : memref<8x402xf32, #tpu.memory_space<vmem>>, vector<4x256xf32>
    %c0_28 = arith.constant 0 : index
    %c145 = arith.constant 145 : index
    %60 = vector.load %arg20[%c0_28, %c145] : memref<8x402xf32, #tpu.memory_space<vmem>>, vector<4x256xf32>
    %cst_29 = arith.constant 0.000000e+00 : f32
    %61 = vector.shape_cast %20 : vector<1x256xi1> to vector<1x256xi1>
    %62 = vector.broadcast %61 : vector<1x256xi1> to vector<4x256xi1>
    %63 = vector.broadcast %cst_29 : f32 to vector<4x256xf32>
    %64 = arith.select %62, %60, %63 : vector<4x256xi1>, vector<4x256xf32>
    %c0_30 = arith.constant 0 : index
    %c0_31 = arith.constant 0 : index
    %65 = vector.load %arg21[%c0_30, %c0_31] : memref<72x256xf32, #tpu.memory_space<vmem>>, vector<4x256xf32>
    tpu.vector_store %arg21[%c0_30, %c0_31], %36 {strides = array<i32>} : memref<72x256xf32, #tpu.memory_space<vmem>>, vector<4x256xf32>,
    %c4 = arith.constant 4 : index
    %c0_32 = arith.constant 0 : index
    %66 = vector.load %arg21[%c4, %c0_32] : memref<72x256xf32, #tpu.memory_space<vmem>>, vector<4x256xf32>
    tpu.vector_store %arg21[%c4, %c0_32], %37 {strides = array<i32>} : memref<72x256xf32, #tpu.memory_space<vmem>>, vector<4x256xf32>,
    %c8 = arith.constant 8 : index
    %c0_33 = arith.constant 0 : index
    %67 = vector.load %arg21[%c8, %c0_33] : memref<72x256xf32, #tpu.memory_space<vmem>>, vector<4x256xf32>
    tpu.vector_store %arg21[%c8, %c0_33], %42 {strides = array<i32>} : memref<72x256xf32, #tpu.memory_space<vmem>>, vector<4x256xf32>,
    %c12 = arith.constant 12 : index
    %c0_34 = arith.constant 0 : index
    %68 = vector.load %arg21[%c12, %c0_34] : memref<72x256xf32, #tpu.memory_space<vmem>>, vector<4x256xf32>
    tpu.vector_store %arg21[%c12, %c0_34], %47 {strides = array<i32>} : memref<72x256xf32, #tpu.memory_space<vmem>>, vector<4x256xf32>,
    %c16 = arith.constant 16 : index
    %c0_35 = arith.constant 0 : index
    %69 = vector.load %arg21[%c16, %c0_35] : memref<72x256xf32, #tpu.memory_space<vmem>>, vector<4x256xf32>
    tpu.vector_store %arg21[%c16, %c0_35], %48 {strides = array<i32>} : memref<72x256xf32, #tpu.memory_space<vmem>>, vector<4x256xf32>,
    %c20 = arith.constant 20 : index
    %c0_36 = arith.constant 0 : index
    %70 = vector.load %arg21[%c20, %c0_36] : memref<72x256xf32, #tpu.memory_space<vmem>>, vector<4x256xf32>
    tpu.vector_store %arg21[%c20, %c0_36], %53 {strides = array<i32>} : memref<72x256xf32, #tpu.memory_space<vmem>>, vector<4x256xf32>,
    %c24 = arith.constant 24 : index
    %c0_37 = arith.constant 0 : index
    %71 = vector.load %arg21[%c24, %c0_37] : memref<72x256xf32, #tpu.memory_space<vmem>>, vector<4x256xf32>
    tpu.vector_store %arg21[%c24, %c0_37], %58 {strides = array<i32>} : memref<72x256xf32, #tpu.memory_space<vmem>>, vector<4x256xf32>,
    %c28 = arith.constant 28 : index
    %c0_38 = arith.constant 0 : index
    %72 = vector.load %arg21[%c28, %c0_38] : memref<72x256xf32, #tpu.memory_space<vmem>>, vector<4x256xf32>
    tpu.vector_store %arg21[%c28, %c0_38], %59 {strides = array<i32>} : memref<72x256xf32, #tpu.memory_space<vmem>>, vector<4x256xf32>,
    %c32 = arith.constant 32 : index
    %c0_39 = arith.constant 0 : index
    %73 = vector.load %arg21[%c32, %c0_39] : memref<72x256xf32, #tpu.memory_space<vmem>>, vector<4x256xf32>
    tpu.vector_store %arg21[%c32, %c0_39], %64 {strides = array<i32>} : memref<72x256xf32, #tpu.memory_space<vmem>>, vector<4x256xf32>,
    %c0_40 = arith.constant 0 : index
    %c0_41 = arith.constant 0 : index
    %74 = vector.load %arg21[%c0_40, %c0_41] : memref<72x256xf32, #tpu.memory_space<vmem>>, vector<36x256xf32>
    %75 = arith.truncf %74 : vector<36x256xf32> to vector<36x256xbf16>
    %c0_42 = arith.constant 0 : index
    %c0_43 = arith.constant 0 : index
    %76 = vector.load %arg4[%c0_42, %c0_43] : memref<8x36xbf16, #tpu.memory_space<vmem>>, vector<8x36xbf16>
    %cst_44 = arith.constant dense<0.000000e+00> : vector<8x256xf32>
    %77 = tpu.matmul %76, %75, %cst_44 {dimension_numbers = #tpu.dot_dimension_numbers<[1], [0], [0], [1], [0, 0, 1, 1], [], []>} : vector<8x36xbf16>, vector<36x256xbf16>, vector<8x256xf32> -> vector<8x256xf32>
    %c0_45 = arith.constant 0 : index
    %c0_46 = arith.constant 0 : index
    %78 = vector.load %arg5[%c0_45, %c0_46] : memref<8x1xf32, #tpu.memory_space<vmem>>, vector<8x1xf32>
    %79 = vector.broadcast %78 : vector<8x1xf32> to vector<8x256xf32>
    %80 = arith.mulf %77, %79 : vector<8x256xf32>
    %c0_47 = arith.constant 0 : index
    %c0_48 = arith.constant 0 : index
    %81 = vector.load %arg6[%c0_47, %c0_48] : memref<8x1xf32, #tpu.memory_space<vmem>>, vector<8x1xf32>
    %82 = vector.broadcast %81 : vector<8x1xf32> to vector<8x256xf32>
    %83 = arith.addf %80, %82 : vector<8x256xf32>
    %84 = arith.negf %83 : vector<8x256xf32>
    %85 = math.exp %84 : vector<8x256xf32>
    %cst_49 = arith.constant 1.000000e+00 : f32
    %86 = vector.broadcast %cst_49 : f32 to vector<8x256xf32>
    %87 = arith.addf %86, %85 : vector<8x256xf32>
    %88 = arith.divf %86, %87 : vector<8x256xf32>
    %89 = arith.mulf %83, %88 : vector<8x256xf32>
    %c0_50 = arith.constant 0 : index
    %c128_51 = arith.constant 128 : index
    %90 = vector.load %arg20[%c0_50, %c128_51] : memref<8x402xf32, #tpu.memory_space<vmem>>, vector<8x256xf32>
    tpu.vector_store %arg20[%c0_50, %c128_51], %89 {strides = array<i32>} : memref<8x402xf32, #tpu.memory_space<vmem>>, vector<8x256xf32>,
    %c0_52 = arith.constant 0 : index
    %c111_53 = arith.constant 111 : index
    %91 = vector.load %arg20[%c0_52, %c111_53] : memref<8x402xf32, #tpu.memory_space<vmem>>, vector<8x256xf32>
    %cst_54 = arith.constant 0.000000e+00 : f32
    %92 = vector.shape_cast %18 : vector<1x256xi1> to vector<1x256xi1>
    %93 = vector.broadcast %92 : vector<1x256xi1> to vector<8x256xi1>
    %94 = vector.broadcast %cst_54 : f32 to vector<8x256xf32>
    %95 = arith.select %93, %91, %94 : vector<8x256xi1>, vector<8x256xf32>
    %c0_55 = arith.constant 0 : index
    %c112_56 = arith.constant 112 : index
    %96 = vector.load %arg20[%c0_55, %c112_56] : memref<8x402xf32, #tpu.memory_space<vmem>>, vector<8x256xf32>
    %c0_57 = arith.constant 0 : index
    %c113_58 = arith.constant 113 : index
    %97 = vector.load %arg20[%c0_57, %c113_58] : memref<8x402xf32, #tpu.memory_space<vmem>>, vector<8x256xf32>
    %cst_59 = arith.constant 0.000000e+00 : f32
    %98 = vector.shape_cast %20 : vector<1x256xi1> to vector<1x256xi1>
    %99 = vector.broadcast %98 : vector<1x256xi1> to vector<8x256xi1>
    %100 = vector.broadcast %cst_59 : f32 to vector<8x256xf32>
    %101 = arith.select %99, %97, %100 : vector<8x256xi1>, vector<8x256xf32>
    %c0_60 = arith.constant 0 : index
    %c127_61 = arith.constant 127 : index
    %102 = vector.load %arg20[%c0_60, %c127_61] : memref<8x402xf32, #tpu.memory_space<vmem>>, vector<8x256xf32>
    %cst_62 = arith.constant 0.000000e+00 : f32
    %103 = vector.shape_cast %18 : vector<1x256xi1> to vector<1x256xi1>
    %104 = vector.broadcast %103 : vector<1x256xi1> to vector<8x256xi1>
    %105 = vector.broadcast %cst_62 : f32 to vector<8x256xf32>
    %106 = arith.select %104, %102, %105 : vector<8x256xi1>, vector<8x256xf32>
    %c0_63 = arith.constant 0 : index
    %c128_64 = arith.constant 128 : index
    %107 = vector.load %arg20[%c0_63, %c128_64] : memref<8x402xf32, #tpu.memory_space<vmem>>, vector<8x256xf32>
    %c0_65 = arith.constant 0 : index
    %c129_66 = arith.constant 129 : index
    %108 = vector.load %arg20[%c0_65, %c129_66] : memref<8x402xf32, #tpu.memory_space<vmem>>, vector<8x256xf32>
    %cst_67 = arith.constant 0.000000e+00 : f32
    %109 = vector.shape_cast %20 : vector<1x256xi1> to vector<1x256xi1>
    %110 = vector.broadcast %109 : vector<1x256xi1> to vector<8x256xi1>
    %111 = vector.broadcast %cst_67 : f32 to vector<8x256xf32>
    %112 = arith.select %110, %108, %111 : vector<8x256xi1>, vector<8x256xf32>
    %c0_68 = arith.constant 0 : index
    %c143_69 = arith.constant 143 : index
    %113 = vector.load %arg20[%c0_68, %c143_69] : memref<8x402xf32, #tpu.memory_space<vmem>>, vector<8x256xf32>
    %cst_70 = arith.constant 0.000000e+00 : f32
    %114 = vector.shape_cast %18 : vector<1x256xi1> to vector<1x256xi1>
    %115 = vector.broadcast %114 : vector<1x256xi1> to vector<8x256xi1>
    %116 = vector.broadcast %cst_70 : f32 to vector<8x256xf32>
    %117 = arith.select %115, %113, %116 : vector<8x256xi1>, vector<8x256xf32>
    %c0_71 = arith.constant 0 : index
    %c144_72 = arith.constant 144 : index
    %118 = vector.load %arg20[%c0_71, %c144_72] : memref<8x402xf32, #tpu.memory_space<vmem>>, vector<8x256xf32>
    %c0_73 = arith.constant 0 : index
    %c145_74 = arith.constant 145 : index
    %119 = vector.load %arg20[%c0_73, %c145_74] : memref<8x402xf32, #tpu.memory_space<vmem>>, vector<8x256xf32>
    %cst_75 = arith.constant 0.000000e+00 : f32
    %120 = vector.shape_cast %20 : vector<1x256xi1> to vector<1x256xi1>
    %121 = vector.broadcast %120 : vector<1x256xi1> to vector<8x256xi1>
    %122 = vector.broadcast %cst_75 : f32 to vector<8x256xf32>
    %123 = arith.select %121, %119, %122 : vector<8x256xi1>, vector<8x256xf32>
    %c0_76 = arith.constant 0 : index
    %c0_77 = arith.constant 0 : index
    %124 = vector.load %arg21[%c0_76, %c0_77] : memref<72x256xf32, #tpu.memory_space<vmem>>, vector<8x256xf32>
    tpu.vector_store %arg21[%c0_76, %c0_77], %95 {strides = array<i32>} : memref<72x256xf32, #tpu.memory_space<vmem>>, vector<8x256xf32>,
    %c8_78 = arith.constant 8 : index
    %c0_79 = arith.constant 0 : index
    %125 = vector.load %arg21[%c8_78, %c0_79] : memref<72x256xf32, #tpu.memory_space<vmem>>, vector<8x256xf32>
    tpu.vector_store %arg21[%c8_78, %c0_79], %96 {strides = array<i32>} : memref<72x256xf32, #tpu.memory_space<vmem>>, vector<8x256xf32>,
    %c16_80 = arith.constant 16 : index
    %c0_81 = arith.constant 0 : index
    %126 = vector.load %arg21[%c16_80, %c0_81] : memref<72x256xf32, #tpu.memory_space<vmem>>, vector<8x256xf32>
    tpu.vector_store %arg21[%c16_80, %c0_81], %101 {strides = array<i32>} : memref<72x256xf32, #tpu.memory_space<vmem>>, vector<8x256xf32>,
    %c24_82 = arith.constant 24 : index
    %c0_83 = arith.constant 0 : index
    %127 = vector.load %arg21[%c24_82, %c0_83] : memref<72x256xf32, #tpu.memory_space<vmem>>, vector<8x256xf32>
    tpu.vector_store %arg21[%c24_82, %c0_83], %106 {strides = array<i32>} : memref<72x256xf32, #tpu.memory_space<vmem>>, vector<8x256xf32>,
    %c32_84 = arith.constant 32 : index
    %c0_85 = arith.constant 0 : index
    %128 = vector.load %arg21[%c32_84, %c0_85] : memref<72x256xf32, #tpu.memory_space<vmem>>, vector<8x256xf32>
    tpu.vector_store %arg21[%c32_84, %c0_85], %107 {strides = array<i32>} : memref<72x256xf32, #tpu.memory_space<vmem>>, vector<8x256xf32>,
    %c40 = arith.constant 40 : index
    %c0_86 = arith.constant 0 : index
    %129 = vector.load %arg21[%c40, %c0_86] : memref<72x256xf32, #tpu.memory_space<vmem>>, vector<8x256xf32>
    tpu.vector_store %arg21[%c40, %c0_86], %112 {strides = array<i32>} : memref<72x256xf32, #tpu.memory_space<vmem>>, vector<8x256xf32>,
    %c48 = arith.constant 48 : index
    %c0_87 = arith.constant 0 : index
    %130 = vector.load %arg21[%c48, %c0_87] : memref<72x256xf32, #tpu.memory_space<vmem>>, vector<8x256xf32>
    tpu.vector_store %arg21[%c48, %c0_87], %117 {strides = array<i32>} : memref<72x256xf32, #tpu.memory_space<vmem>>, vector<8x256xf32>,
    %c56 = arith.constant 56 : index
    %c0_88 = arith.constant 0 : index
    %131 = vector.load %arg21[%c56, %c0_88] : memref<72x256xf32, #tpu.memory_space<vmem>>, vector<8x256xf32>
    tpu.vector_store %arg21[%c56, %c0_88], %118 {strides = array<i32>} : memref<72x256xf32, #tpu.memory_space<vmem>>, vector<8x256xf32>,
    %c64 = arith.constant 64 : index
    %c0_89 = arith.constant 0 : index
    %132 = vector.load %arg21[%c64, %c0_89] : memref<72x256xf32, #tpu.memory_space<vmem>>, vector<8x256xf32>
    tpu.vector_store %arg21[%c64, %c0_89], %123 {strides = array<i32>} : memref<72x256xf32, #tpu.memory_space<vmem>>, vector<8x256xf32>,
    %c0_90 = arith.constant 0 : index
    %c0_91 = arith.constant 0 : index
    %133 = vector.load %arg21[%c0_90, %c0_91] : memref<72x256xf32, #tpu.memory_space<vmem>>, vector<72x256xf32>
    %134 = arith.truncf %133 : vector<72x256xf32> to vector<72x256xbf16>
    %c0_92 = arith.constant 0 : index
    %c0_93 = arith.constant 0 : index
    %135 = vector.load %arg7[%c0_92, %c0_93] : memref<8x72xbf16, #tpu.memory_space<vmem>>, vector<8x72xbf16>
    %cst_94 = arith.constant dense<0.000000e+00> : vector<8x256xf32>
    %136 = tpu.matmul %135, %134, %cst_94 {dimension_numbers = #tpu.dot_dimension_numbers<[1], [0], [0], [1], [0, 0, 1, 1], [], []>} : vector<8x72xbf16>, vector<72x256xbf16>, vector<8x256xf32> -> vector<8x256xf32>
    %c0_95 = arith.constant 0 : index
    %c0_96 = arith.constant 0 : index
    %137 = vector.load %arg8[%c0_95, %c0_96] : memref<8x1xf32, #tpu.memory_space<vmem>>, vector<8x1xf32>
    %138 = vector.broadcast %137 : vector<8x1xf32> to vector<8x256xf32>
    %139 = arith.mulf %136, %138 : vector<8x256xf32>
    %c0_97 = arith.constant 0 : index
    %c0_98 = arith.constant 0 : index
    %140 = vector.load %arg9[%c0_97, %c0_98] : memref<8x1xf32, #tpu.memory_space<vmem>>, vector<8x1xf32>
    %141 = vector.broadcast %140 : vector<8x1xf32> to vector<8x256xf32>
    %142 = arith.addf %139, %141 : vector<8x256xf32>
    %143 = arith.negf %142 : vector<8x256xf32>
    %144 = math.exp %143 : vector<8x256xf32>
    %cst_99 = arith.constant 1.000000e+00 : f32
    %145 = vector.broadcast %cst_99 : f32 to vector<8x256xf32>
    %146 = arith.addf %145, %144 : vector<8x256xf32>
    %147 = arith.divf %145, %146 : vector<8x256xf32>
    %148 = arith.mulf %142, %147 : vector<8x256xf32>
    %149 = arith.addf %148, %30 : vector<8x256xf32>
    %c0_100 = arith.constant 0 : index
    %c0_101 = arith.constant 0 : index
    %c0_102 = arith.constant 0 : index
    %150 = vector.load %arg17[%c0_100, %c0_101, %c0_102] : memref<1x8x256xf32, #tpu.memory_space<vmem>>, vector<1x8x256xf32>
    %151 = vector.shape_cast %150 : vector<1x8x256xf32> to vector<8x256xf32>
    %152 = vector.shape_cast %149 : vector<8x256xf32> to vector<1x8x256xf32>
    tpu.vector_store %arg17[%c0_100, %c0_101, %c0_102], %152 {strides = array<i32>} : memref<1x8x256xf32, #tpu.memory_space<vmem>>, vector<1x8x256xf32>,
    %c0_103 = arith.constant 0 : index
    %c128_104 = arith.constant 128 : index
    %153 = vector.load %arg20[%c0_103, %c128_104] : memref<8x402xf32, #tpu.memory_space<vmem>>, vector<8x256xf32>
    tpu.vector_store %arg20[%c0_103, %c128_104], %149 {strides = array<i32>} : memref<8x402xf32, #tpu.memory_space<vmem>>, vector<8x256xf32>,
    %c0_105 = arith.constant 0 : index
    %c111_106 = arith.constant 111 : index
    %154 = vector.load %arg20[%c0_105, %c111_106] : memref<8x402xf32, #tpu.memory_space<vmem>>, vector<8x256xf32>
    %cst_107 = arith.constant 0.000000e+00 : f32
    %155 = vector.shape_cast %18 : vector<1x256xi1> to vector<1x256xi1>
    %156 = vector.broadcast %155 : vector<1x256xi1> to vector<8x256xi1>
    %157 = vector.broadcast %cst_107 : f32 to vector<8x256xf32>
    %158 = arith.select %156, %154, %157 : vector<8x256xi1>, vector<8x256xf32>
    %c0_108 = arith.constant 0 : index
    %c112_109 = arith.constant 112 : index
    %159 = vector.load %arg20[%c0_108, %c112_109] : memref<8x402xf32, #tpu.memory_space<vmem>>, vector<8x256xf32>
    %c0_110 = arith.constant 0 : index
    %c113_111 = arith.constant 113 : index
    %160 = vector.load %arg20[%c0_110, %c113_111] : memref<8x402xf32, #tpu.memory_space<vmem>>, vector<8x256xf32>
    %cst_112 = arith.constant 0.000000e+00 : f32
    %161 = vector.shape_cast %20 : vector<1x256xi1> to vector<1x256xi1>
    %162 = vector.broadcast %161 : vector<1x256xi1> to vector<8x256xi1>
    %163 = vector.broadcast %cst_112 : f32 to vector<8x256xf32>
    %164 = arith.select %162, %160, %163 : vector<8x256xi1>, vector<8x256xf32>
    %c0_113 = arith.constant 0 : index
    %c127_114 = arith.constant 127 : index
    %165 = vector.load %arg20[%c0_113, %c127_114] : memref<8x402xf32, #tpu.memory_space<vmem>>, vector<8x256xf32>
    %cst_115 = arith.constant 0.000000e+00 : f32
    %166 = vector.shape_cast %18 : vector<1x256xi1> to vector<1x256xi1>
    %167 = vector.broadcast %166 : vector<1x256xi1> to vector<8x256xi1>
    %168 = vector.broadcast %cst_115 : f32 to vector<8x256xf32>
    %169 = arith.select %167, %165, %168 : vector<8x256xi1>, vector<8x256xf32>
    %c0_116 = arith.constant 0 : index
    %c128_117 = arith.constant 128 : index
    %170 = vector.load %arg20[%c0_116, %c128_117] : memref<8x402xf32, #tpu.memory_space<vmem>>, vector<8x256xf32>
    %c0_118 = arith.constant 0 : index
    %c129_119 = arith.constant 129 : index
    %171 = vector.load %arg20[%c0_118, %c129_119] : memref<8x402xf32, #tpu.memory_space<vmem>>, vector<8x256xf32>
    %cst_120 = arith.constant 0.000000e+00 : f32
    %172 = vector.shape_cast %20 : vector<1x256xi1> to vector<1x256xi1>
    %173 = vector.broadcast %172 : vector<1x256xi1> to vector<8x256xi1>
    %174 = vector.broadcast %cst_120 : f32 to vector<8x256xf32>
    %175 = arith.select %173, %171, %174 : vector<8x256xi1>, vector<8x256xf32>
    %c0_121 = arith.constant 0 : index
    %c143_122 = arith.constant 143 : index
    %176 = vector.load %arg20[%c0_121, %c143_122] : memref<8x402xf32, #tpu.memory_space<vmem>>, vector<8x256xf32>
    %cst_123 = arith.constant 0.000000e+00 : f32
    %177 = vector.shape_cast %18 : vector<1x256xi1> to vector<1x256xi1>
    %178 = vector.broadcast %177 : vector<1x256xi1> to vector<8x256xi1>
    %179 = vector.broadcast %cst_123 : f32 to vector<8x256xf32>
    %180 = arith.select %178, %176, %179 : vector<8x256xi1>, vector<8x256xf32>
    %c0_124 = arith.constant 0 : index
    %c144_125 = arith.constant 144 : index
    %181 = vector.load %arg20[%c0_124, %c144_125] : memref<8x402xf32, #tpu.memory_space<vmem>>, vector<8x256xf32>
    %c0_126 = arith.constant 0 : index
    %c145_127 = arith.constant 145 : index
    %182 = vector.load %arg20[%c0_126, %c145_127] : memref<8x402xf32, #tpu.memory_space<vmem>>, vector<8x256xf32>
    %cst_128 = arith.constant 0.000000e+00 : f32
    %183 = vector.shape_cast %20 : vector<1x256xi1> to vector<1x256xi1>
    %184 = vector.broadcast %183 : vector<1x256xi1> to vector<8x256xi1>
    %185 = vector.broadcast %cst_128 : f32 to vector<8x256xf32>
    %186 = arith.select %184, %182, %185 : vector<8x256xi1>, vector<8x256xf32>
    %c0_129 = arith.constant 0 : index
    %c0_130 = arith.constant 0 : index
    %187 = vector.load %arg21[%c0_129, %c0_130] : memref<72x256xf32, #tpu.memory_space<vmem>>, vector<8x256xf32>
    tpu.vector_store %arg21[%c0_129, %c0_130], %158 {strides = array<i32>} : memref<72x256xf32, #tpu.memory_space<vmem>>, vector<8x256xf32>,
    %c8_131 = arith.constant 8 : index
    %c0_132 = arith.constant 0 : index
    %188 = vector.load %arg21[%c8_131, %c0_132] : memref<72x256xf32, #tpu.memory_space<vmem>>, vector<8x256xf32>
    tpu.vector_store %arg21[%c8_131, %c0_132], %159 {strides = array<i32>} : memref<72x256xf32, #tpu.memory_space<vmem>>, vector<8x256xf32>,
    %c16_133 = arith.constant 16 : index
    %c0_134 = arith.constant 0 : index
    %189 = vector.load %arg21[%c16_133, %c0_134] : memref<72x256xf32, #tpu.memory_space<vmem>>, vector<8x256xf32>
    tpu.vector_store %arg21[%c16_133, %c0_134], %164 {strides = array<i32>} : memref<72x256xf32, #tpu.memory_space<vmem>>, vector<8x256xf32>,
    %c24_135 = arith.constant 24 : index
    %c0_136 = arith.constant 0 : index
    %190 = vector.load %arg21[%c24_135, %c0_136] : memref<72x256xf32, #tpu.memory_space<vmem>>, vector<8x256xf32>
    tpu.vector_store %arg21[%c24_135, %c0_136], %169 {strides = array<i32>} : memref<72x256xf32, #tpu.memory_space<vmem>>, vector<8x256xf32>,
    %c32_137 = arith.constant 32 : index
    %c0_138 = arith.constant 0 : index
    %191 = vector.load %arg21[%c32_137, %c0_138] : memref<72x256xf32, #tpu.memory_space<vmem>>, vector<8x256xf32>
    tpu.vector_store %arg21[%c32_137, %c0_138], %170 {strides = array<i32>} : memref<72x256xf32, #tpu.memory_space<vmem>>, vector<8x256xf32>,
    %c40_139 = arith.constant 40 : index
    %c0_140 = arith.constant 0 : index
    %192 = vector.load %arg21[%c40_139, %c0_140] : memref<72x256xf32, #tpu.memory_space<vmem>>, vector<8x256xf32>
    tpu.vector_store %arg21[%c40_139, %c0_140], %175 {strides = array<i32>} : memref<72x256xf32, #tpu.memory_space<vmem>>, vector<8x256xf32>,
    %c48_141 = arith.constant 48 : index
    %c0_142 = arith.constant 0 : index
    %193 = vector.load %arg21[%c48_141, %c0_142] : memref<72x256xf32, #tpu.memory_space<vmem>>, vector<8x256xf32>
    tpu.vector_store %arg21[%c48_141, %c0_142], %180 {strides = array<i32>} : memref<72x256xf32, #tpu.memory_space<vmem>>, vector<8x256xf32>,
    %c56_143 = arith.constant 56 : index
    %c0_144 = arith.constant 0 : index
    %194 = vector.load %arg21[%c56_143, %c0_144] : memref<72x256xf32, #tpu.memory_space<vmem>>, vector<8x256xf32>
    tpu.vector_store %arg21[%c56_143, %c0_144], %181 {strides = array<i32>} : memref<72x256xf32, #tpu.memory_space<vmem>>, vector<8x256xf32>,
    %c64_145 = arith.constant 64 : index
    %c0_146 = arith.constant 0 : index
    %195 = vector.load %arg21[%c64_145, %c0_146] : memref<72x256xf32, #tpu.memory_space<vmem>>, vector<8x256xf32>
    tpu.vector_store %arg21[%c64_145, %c0_146], %186 {strides = array<i32>} : memref<72x256xf32, #tpu.memory_space<vmem>>, vector<8x256xf32>,
    %c0_147 = arith.constant 0 : index
    %c0_148 = arith.constant 0 : index
    %196 = vector.load %arg21[%c0_147, %c0_148] : memref<72x256xf32, #tpu.memory_space<vmem>>, vector<72x256xf32>
    %197 = arith.truncf %196 : vector<72x256xf32> to vector<72x256xbf16>
    %c0_149 = arith.constant 0 : index
    %c0_150 = arith.constant 0 : index
    %198 = vector.load %arg10[%c0_149, %c0_150] : memref<8x72xbf16, #tpu.memory_space<vmem>>, vector<8x72xbf16>
    %cst_151 = arith.constant dense<0.000000e+00> : vector<8x256xf32>
    %199 = tpu.matmul %198, %197, %cst_151 {dimension_numbers = #tpu.dot_dimension_numbers<[1], [0], [0], [1], [0, 0, 1, 1], [], []>} : vector<8x72xbf16>, vector<72x256xbf16>, vector<8x256xf32> -> vector<8x256xf32>
    %c0_152 = arith.constant 0 : index
    %c0_153 = arith.constant 0 : index
    %200 = vector.load %arg11[%c0_152, %c0_153] : memref<8x1xf32, #tpu.memory_space<vmem>>, vector<8x1xf32>
    %201 = vector.broadcast %200 : vector<8x1xf32> to vector<8x256xf32>
    %202 = arith.mulf %199, %201 : vector<8x256xf32>
    %c0_154 = arith.constant 0 : index
    %c0_155 = arith.constant 0 : index
    %203 = vector.load %arg12[%c0_154, %c0_155] : memref<8x1xf32, #tpu.memory_space<vmem>>, vector<8x1xf32>
    %204 = vector.broadcast %203 : vector<8x1xf32> to vector<8x256xf32>
    %205 = arith.addf %202, %204 : vector<8x256xf32>
    %206 = arith.negf %205 : vector<8x256xf32>
    %207 = math.exp %206 : vector<8x256xf32>
    %cst_156 = arith.constant 1.000000e+00 : f32
    %208 = vector.broadcast %cst_156 : f32 to vector<8x256xf32>
    %209 = arith.addf %208, %207 : vector<8x256xf32>
    %210 = arith.divf %208, %209 : vector<8x256xf32>
    %211 = arith.mulf %205, %210 : vector<8x256xf32>
    %c0_157 = arith.constant 0 : index
    %c128_158 = arith.constant 128 : index
    %212 = vector.load %arg20[%c0_157, %c128_158] : memref<8x402xf32, #tpu.memory_space<vmem>>, vector<8x256xf32>
    tpu.vector_store %arg20[%c0_157, %c128_158], %211 {strides = array<i32>} : memref<8x402xf32, #tpu.memory_space<vmem>>, vector<8x256xf32>,
    %c0_159 = arith.constant 0 : index
    %c111_160 = arith.constant 111 : index
    %213 = vector.load %arg20[%c0_159, %c111_160] : memref<8x402xf32, #tpu.memory_space<vmem>>, vector<8x256xf32>
    %cst_161 = arith.constant 0.000000e+00 : f32
    %214 = vector.shape_cast %18 : vector<1x256xi1> to vector<1x256xi1>
    %215 = vector.broadcast %214 : vector<1x256xi1> to vector<8x256xi1>
    %216 = vector.broadcast %cst_161 : f32 to vector<8x256xf32>
    %217 = arith.select %215, %213, %216 : vector<8x256xi1>, vector<8x256xf32>
    %c0_162 = arith.constant 0 : index
    %c112_163 = arith.constant 112 : index
    %218 = vector.load %arg20[%c0_162, %c112_163] : memref<8x402xf32, #tpu.memory_space<vmem>>, vector<8x256xf32>
    %c0_164 = arith.constant 0 : index
    %c113_165 = arith.constant 113 : index
    %219 = vector.load %arg20[%c0_164, %c113_165] : memref<8x402xf32, #tpu.memory_space<vmem>>, vector<8x256xf32>
    %cst_166 = arith.constant 0.000000e+00 : f32
    %220 = vector.shape_cast %20 : vector<1x256xi1> to vector<1x256xi1>
    %221 = vector.broadcast %220 : vector<1x256xi1> to vector<8x256xi1>
    %222 = vector.broadcast %cst_166 : f32 to vector<8x256xf32>
    %223 = arith.select %221, %219, %222 : vector<8x256xi1>, vector<8x256xf32>
    %c0_167 = arith.constant 0 : index
    %c127_168 = arith.constant 127 : index
    %224 = vector.load %arg20[%c0_167, %c127_168] : memref<8x402xf32, #tpu.memory_space<vmem>>, vector<8x256xf32>
    %cst_169 = arith.constant 0.000000e+00 : f32
    %225 = vector.shape_cast %18 : vector<1x256xi1> to vector<1x256xi1>
    %226 = vector.broadcast %225 : vector<1x256xi1> to vector<8x256xi1>
    %227 = vector.broadcast %cst_169 : f32 to vector<8x256xf32>
    %228 = arith.select %226, %224, %227 : vector<8x256xi1>, vector<8x256xf32>
    %c0_170 = arith.constant 0 : index
    %c128_171 = arith.constant 128 : index
    %229 = vector.load %arg20[%c0_170, %c128_171] : memref<8x402xf32, #tpu.memory_space<vmem>>, vector<8x256xf32>
    %c0_172 = arith.constant 0 : index
    %c129_173 = arith.constant 129 : index
    %230 = vector.load %arg20[%c0_172, %c129_173] : memref<8x402xf32, #tpu.memory_space<vmem>>, vector<8x256xf32>
    %cst_174 = arith.constant 0.000000e+00 : f32
    %231 = vector.shape_cast %20 : vector<1x256xi1> to vector<1x256xi1>
    %232 = vector.broadcast %231 : vector<1x256xi1> to vector<8x256xi1>
    %233 = vector.broadcast %cst_174 : f32 to vector<8x256xf32>
    %234 = arith.select %232, %230, %233 : vector<8x256xi1>, vector<8x256xf32>
    %c0_175 = arith.constant 0 : index
    %c143_176 = arith.constant 143 : index
    %235 = vector.load %arg20[%c0_175, %c143_176] : memref<8x402xf32, #tpu.memory_space<vmem>>, vector<8x256xf32>
    %cst_177 = arith.constant 0.000000e+00 : f32
    %236 = vector.shape_cast %18 : vector<1x256xi1> to vector<1x256xi1>
    %237 = vector.broadcast %236 : vector<1x256xi1> to vector<8x256xi1>
    %238 = vector.broadcast %cst_177 : f32 to vector<8x256xf32>
    %239 = arith.select %237, %235, %238 : vector<8x256xi1>, vector<8x256xf32>
    %c0_178 = arith.constant 0 : index
    %c144_179 = arith.constant 144 : index
    %240 = vector.load %arg20[%c0_178, %c144_179] : memref<8x402xf32, #tpu.memory_space<vmem>>, vector<8x256xf32>
    %c0_180 = arith.constant 0 : index
    %c145_181 = arith.constant 145 : index
    %241 = vector.load %arg20[%c0_180, %c145_181] : memref<8x402xf32, #tpu.memory_space<vmem>>, vector<8x256xf32>
    %cst_182 = arith.constant 0.000000e+00 : f32
    %242 = vector.shape_cast %20 : vector<1x256xi1> to vector<1x256xi1>
    %243 = vector.broadcast %242 : vector<1x256xi1> to vector<8x256xi1>
    %244 = vector.broadcast %cst_182 : f32 to vector<8x256xf32>
    %245 = arith.select %243, %241, %244 : vector<8x256xi1>, vector<8x256xf32>
    %c0_183 = arith.constant 0 : index
    %c0_184 = arith.constant 0 : index
    %246 = vector.load %arg21[%c0_183, %c0_184] : memref<72x256xf32, #tpu.memory_space<vmem>>, vector<8x256xf32>
    tpu.vector_store %arg21[%c0_183, %c0_184], %217 {strides = array<i32>} : memref<72x256xf32, #tpu.memory_space<vmem>>, vector<8x256xf32>,
    %c8_185 = arith.constant 8 : index
    %c0_186 = arith.constant 0 : index
    %247 = vector.load %arg21[%c8_185, %c0_186] : memref<72x256xf32, #tpu.memory_space<vmem>>, vector<8x256xf32>
    tpu.vector_store %arg21[%c8_185, %c0_186], %218 {strides = array<i32>} : memref<72x256xf32, #tpu.memory_space<vmem>>, vector<8x256xf32>,
    %c16_187 = arith.constant 16 : index
    %c0_188 = arith.constant 0 : index
    %248 = vector.load %arg21[%c16_187, %c0_188] : memref<72x256xf32, #tpu.memory_space<vmem>>, vector<8x256xf32>
    tpu.vector_store %arg21[%c16_187, %c0_188], %223 {strides = array<i32>} : memref<72x256xf32, #tpu.memory_space<vmem>>, vector<8x256xf32>,
    %c24_189 = arith.constant 24 : index
    %c0_190 = arith.constant 0 : index
    %249 = vector.load %arg21[%c24_189, %c0_190] : memref<72x256xf32, #tpu.memory_space<vmem>>, vector<8x256xf32>
    tpu.vector_store %arg21[%c24_189, %c0_190], %228 {strides = array<i32>} : memref<72x256xf32, #tpu.memory_space<vmem>>, vector<8x256xf32>,
    %c32_191 = arith.constant 32 : index
    %c0_192 = arith.constant 0 : index
    %250 = vector.load %arg21[%c32_191, %c0_192] : memref<72x256xf32, #tpu.memory_space<vmem>>, vector<8x256xf32>
    tpu.vector_store %arg21[%c32_191, %c0_192], %229 {strides = array<i32>} : memref<72x256xf32, #tpu.memory_space<vmem>>, vector<8x256xf32>,
    %c40_193 = arith.constant 40 : index
    %c0_194 = arith.constant 0 : index
    %251 = vector.load %arg21[%c40_193, %c0_194] : memref<72x256xf32, #tpu.memory_space<vmem>>, vector<8x256xf32>
    tpu.vector_store %arg21[%c40_193, %c0_194], %234 {strides = array<i32>} : memref<72x256xf32, #tpu.memory_space<vmem>>, vector<8x256xf32>,
    %c48_195 = arith.constant 48 : index
    %c0_196 = arith.constant 0 : index
    %252 = vector.load %arg21[%c48_195, %c0_196] : memref<72x256xf32, #tpu.memory_space<vmem>>, vector<8x256xf32>
    tpu.vector_store %arg21[%c48_195, %c0_196], %239 {strides = array<i32>} : memref<72x256xf32, #tpu.memory_space<vmem>>, vector<8x256xf32>,
    %c56_197 = arith.constant 56 : index
    %c0_198 = arith.constant 0 : index
    %253 = vector.load %arg21[%c56_197, %c0_198] : memref<72x256xf32, #tpu.memory_space<vmem>>, vector<8x256xf32>
    tpu.vector_store %arg21[%c56_197, %c0_198], %240 {strides = array<i32>} : memref<72x256xf32, #tpu.memory_space<vmem>>, vector<8x256xf32>,
    %c64_199 = arith.constant 64 : index
    %c0_200 = arith.constant 0 : index
    %254 = vector.load %arg21[%c64_199, %c0_200] : memref<72x256xf32, #tpu.memory_space<vmem>>, vector<8x256xf32>
    tpu.vector_store %arg21[%c64_199, %c0_200], %245 {strides = array<i32>} : memref<72x256xf32, #tpu.memory_space<vmem>>, vector<8x256xf32>,
    %c0_201 = arith.constant 0 : index
    %c0_202 = arith.constant 0 : index
    %255 = vector.load %arg21[%c0_201, %c0_202] : memref<72x256xf32, #tpu.memory_space<vmem>>, vector<72x256xf32>
    %256 = arith.truncf %255 : vector<72x256xf32> to vector<72x256xbf16>
    %c0_203 = arith.constant 0 : index
    %c0_204 = arith.constant 0 : index
    %257 = vector.load %arg13[%c0_203, %c0_204] : memref<8x72xbf16, #tpu.memory_space<vmem>>, vector<8x72xbf16>
    %cst_205 = arith.constant dense<0.000000e+00> : vector<8x256xf32>
    %258 = tpu.matmul %257, %256, %cst_205 {dimension_numbers = #tpu.dot_dimension_numbers<[1], [0], [0], [1], [0, 0, 1, 1], [], []>} : vector<8x72xbf16>, vector<72x256xbf16>, vector<8x256xf32> -> vector<8x256xf32>
    %c0_206 = arith.constant 0 : index
    %c0_207 = arith.constant 0 : index
    %259 = vector.load %arg14[%c0_206, %c0_207] : memref<8x1xf32, #tpu.memory_space<vmem>>, vector<8x1xf32>
    %260 = vector.broadcast %259 : vector<8x1xf32> to vector<8x256xf32>
    %261 = arith.mulf %258, %260 : vector<8x256xf32>
    %c0_208 = arith.constant 0 : index
    %c0_209 = arith.constant 0 : index
    %262 = vector.load %arg15[%c0_208, %c0_209] : memref<8x1xf32, #tpu.memory_space<vmem>>, vector<8x1xf32>
    %263 = vector.broadcast %262 : vector<8x1xf32> to vector<8x256xf32>
    %264 = arith.addf %261, %263 : vector<8x256xf32>
    %265 = arith.negf %264 : vector<8x256xf32>
    %266 = math.exp %265 : vector<8x256xf32>
    %cst_210 = arith.constant 1.000000e+00 : f32
    %267 = vector.broadcast %cst_210 : f32 to vector<8x256xf32>
    %268 = arith.addf %267, %266 : vector<8x256xf32>
    %269 = arith.divf %267, %268 : vector<8x256xf32>
    %270 = arith.mulf %264, %269 : vector<8x256xf32>
    %271 = arith.addf %270, %149 : vector<8x256xf32>
    %c0_211 = arith.constant 0 : index
    %c0_212 = arith.constant 0 : index
    %c0_213 = arith.constant 0 : index
    %272 = vector.load %arg18[%c0_211, %c0_212, %c0_213] : memref<1x8x256xf32, #tpu.memory_space<vmem>>, vector<1x8x256xf32>
    %273 = vector.shape_cast %272 : vector<1x8x256xf32> to vector<8x256xf32>
    %274 = vector.shape_cast %271 : vector<8x256xf32> to vector<1x8x256xf32>
    tpu.vector_store %arg18[%c0_211, %c0_212, %c0_213], %274 {strides = array<i32>} : memref<1x8x256xf32, #tpu.memory_space<vmem>>, vector<1x8x256xf32>,
    %cst_214 = arith.constant 0xFF800000 : f32
    %275 = vector.broadcast %cst_214 : f32 to vector<8x402xf32>
    %c0_215 = arith.constant 0 : index
    %c0_216 = arith.constant 0 : index
    %276 = vector.load %arg20[%c0_215, %c0_216] : memref<8x402xf32, #tpu.memory_space<vmem>>, vector<8x402xf32>
    tpu.vector_store %arg20[%c0_215, %c0_216], %275 {strides = array<i32>} : memref<8x402xf32, #tpu.memory_space<vmem>>, vector<8x402xf32>,
    %c0_217 = arith.constant 0 : index
    %c128_218 = arith.constant 128 : index
    %277 = vector.load %arg20[%c0_217, %c128_218] : memref<8x402xf32, #tpu.memory_space<vmem>>, vector<8x256xf32>
    tpu.vector_store %arg20[%c0_217, %c128_218], %271 {strides = array<i32>} : memref<8x402xf32, #tpu.memory_space<vmem>>, vector<8x256xf32>,
    %cst_219 = arith.constant 0xFF800000 : f32
    %278 = vector.broadcast %cst_219 : f32 to vector<8x256xf32>
    %c0_220 = arith.constant 0 : index
    %c111_221 = arith.constant 111 : index
    %279 = vector.load %arg20[%c0_220, %c111_221] : memref<8x402xf32, #tpu.memory_space<vmem>>, vector<8x256xf32>
    %cst_222 = arith.constant 0xFF800000 : f32
    %280 = vector.shape_cast %18 : vector<1x256xi1> to vector<1x256xi1>
    %281 = vector.broadcast %280 : vector<1x256xi1> to vector<8x256xi1>
    %282 = vector.broadcast %cst_222 : f32 to vector<8x256xf32>
    %283 = arith.select %281, %279, %282 : vector<8x256xi1>, vector<8x256xf32>
    %c0_223 = arith.constant 0 : index
    %c112_224 = arith.constant 112 : index
    %284 = vector.load %arg20[%c0_223, %c112_224] : memref<8x402xf32, #tpu.memory_space<vmem>>, vector<8x256xf32>
    %c0_225 = arith.constant 0 : index
    %c113_226 = arith.constant 113 : index
    %285 = vector.load %arg20[%c0_225, %c113_226] : memref<8x402xf32, #tpu.memory_space<vmem>>, vector<8x256xf32>
    %cst_227 = arith.constant 0xFF800000 : f32
    %286 = vector.shape_cast %20 : vector<1x256xi1> to vector<1x256xi1>
    %287 = vector.broadcast %286 : vector<1x256xi1> to vector<8x256xi1>
    %288 = vector.broadcast %cst_227 : f32 to vector<8x256xf32>
    %289 = arith.select %287, %285, %288 : vector<8x256xi1>, vector<8x256xf32>
    %c0_228 = arith.constant 0 : index
    %c127_229 = arith.constant 127 : index
    %290 = vector.load %arg20[%c0_228, %c127_229] : memref<8x402xf32, #tpu.memory_space<vmem>>, vector<8x256xf32>
    %cst_230 = arith.constant 0xFF800000 : f32
    %291 = vector.shape_cast %18 : vector<1x256xi1> to vector<1x256xi1>
    %292 = vector.broadcast %291 : vector<1x256xi1> to vector<8x256xi1>
    %293 = vector.broadcast %cst_230 : f32 to vector<8x256xf32>
    %294 = arith.select %292, %290, %293 : vector<8x256xi1>, vector<8x256xf32>
    %c0_231 = arith.constant 0 : index
    %c128_232 = arith.constant 128 : index
    %295 = vector.load %arg20[%c0_231, %c128_232] : memref<8x402xf32, #tpu.memory_space<vmem>>, vector<8x256xf32>
    %c0_233 = arith.constant 0 : index
    %c129_234 = arith.constant 129 : index
    %296 = vector.load %arg20[%c0_233, %c129_234] : memref<8x402xf32, #tpu.memory_space<vmem>>, vector<8x256xf32>
    %cst_235 = arith.constant 0xFF800000 : f32
    %297 = vector.shape_cast %20 : vector<1x256xi1> to vector<1x256xi1>
    %298 = vector.broadcast %297 : vector<1x256xi1> to vector<8x256xi1>
    %299 = vector.broadcast %cst_235 : f32 to vector<8x256xf32>
    %300 = arith.select %298, %296, %299 : vector<8x256xi1>, vector<8x256xf32>
    %c0_236 = arith.constant 0 : index
    %c143_237 = arith.constant 143 : index
    %301 = vector.load %arg20[%c0_236, %c143_237] : memref<8x402xf32, #tpu.memory_space<vmem>>, vector<8x256xf32>
    %cst_238 = arith.constant 0xFF800000 : f32
    %302 = vector.shape_cast %18 : vector<1x256xi1> to vector<1x256xi1>
    %303 = vector.broadcast %302 : vector<1x256xi1> to vector<8x256xi1>
    %304 = vector.broadcast %cst_238 : f32 to vector<8x256xf32>
    %305 = arith.select %303, %301, %304 : vector<8x256xi1>, vector<8x256xf32>
    %c0_239 = arith.constant 0 : index
    %c144_240 = arith.constant 144 : index
    %306 = vector.load %arg20[%c0_239, %c144_240] : memref<8x402xf32, #tpu.memory_space<vmem>>, vector<8x256xf32>
    %c0_241 = arith.constant 0 : index
    %c145_242 = arith.constant 145 : index
    %307 = vector.load %arg20[%c0_241, %c145_242] : memref<8x402xf32, #tpu.memory_space<vmem>>, vector<8x256xf32>
    %cst_243 = arith.constant 0xFF800000 : f32
    %308 = vector.shape_cast %20 : vector<1x256xi1> to vector<1x256xi1>
    %309 = vector.broadcast %308 : vector<1x256xi1> to vector<8x256xi1>
    %310 = vector.broadcast %cst_243 : f32 to vector<8x256xf32>
    %311 = arith.select %309, %307, %310 : vector<8x256xi1>, vector<8x256xf32>
    %312 = arith.maximumf %278, %283 : vector<8x256xf32>
    %313 = arith.maximumf %312, %284 : vector<8x256xf32>
    %314 = arith.maximumf %313, %289 : vector<8x256xf32>
    %315 = arith.maximumf %314, %294 : vector<8x256xf32>
    %316 = arith.maximumf %315, %295 : vector<8x256xf32>
    %317 = arith.maximumf %316, %300 : vector<8x256xf32>
    %318 = arith.maximumf %317, %305 : vector<8x256xf32>
    %319 = arith.maximumf %318, %306 : vector<8x256xf32>
    %320 = arith.maximumf %319, %311 : vector<8x256xf32>
    %c0_244 = arith.constant 0 : index
    %c0_245 = arith.constant 0 : index
    %321 = vector.load %arg16[%c0_244, %c0_245] : memref<256x64xf32, #tpu.memory_space<vmem>>, vector<256x64xf32>
    %cst_246 = arith.constant dense<0.000000e+00> : vector<8x64xf32>
    %322 = tpu.matmul %320, %321, %cst_246 {dimension_numbers = #tpu.dot_dimension_numbers<[1], [0], [0], [1], [0, 0, 1, 1], [], []>, precision = #tpu.contract_precision<fp32>} : vector<8x256xf32>, vector<256x64xf32>, vector<8x64xf32> -> vector<8x64xf32>
    %c0_247 = arith.constant 0 : index
    %c0_248 = arith.constant 0 : index
    %c0_249 = arith.constant 0 : index
    %323 = vector.load %arg19[%c0_247, %c0_248, %c0_249] : memref<1x8x64xf32, #tpu.memory_space<vmem>>, vector<1x8x64xf32>
    %324 = vector.shape_cast %323 : vector<1x8x64xf32> to vector<8x64xf32>
    %325 = vector.shape_cast %322 : vector<8x64xf32> to vector<1x8x64xf32>
    tpu.vector_store %arg19[%c0_247, %c0_248, %c0_249], %325 {strides = array<i32>} : memref<1x8x64xf32, #tpu.memory_space<vmem>>, vector<1x8x64xf32>,
    return
  }
  func.func @transform_0(%arg0: i32) -> (i32, i32, i32) {
    %c0_i32 = arith.constant 0 : i32
    %c0_i32_0 = arith.constant 0 : i32
    %c0_i32_1 = arith.constant 0 : i32
    return %arg0, %c0_i32, %c0_i32_0 : i32, i32, i32
  }
  func.func @transform_1(%arg0: i32) -> (i32, i32) {
    %c0_i32 = arith.constant 0 : i32
    %c0_i32_0 = arith.constant 0 : i32
    %c0_i32_1 = arith.constant 0 : i32
    return %c0_i32, %c0_i32_0 : i32, i32
  }
  func.func @transform_2(%arg0: i32) -> (i32, i32) {
    %c0_i32 = arith.constant 0 : i32
    %c0_i32_0 = arith.constant 0 : i32
    %c0_i32_1 = arith.constant 0 : i32
    return %c0_i32, %c0_i32_0 : i32, i32
  }
  func.func @transform_3(%arg0: i32) -> (i32, i32) {
    %c0_i32 = arith.constant 0 : i32
    %c0_i32_0 = arith.constant 0 : i32
    %c0_i32_1 = arith.constant 0 : i32
    return %c0_i32, %c0_i32_0 : i32, i32
  }
  func.func @transform_4(%arg0: i32) -> (i32, i32) {
    %c0_i32 = arith.constant 0 : i32
    %c0_i32_0 = arith.constant 0 : i32
    %c0_i32_1 = arith.constant 0 : i32
    return %c0_i32, %c0_i32_0 : i32, i32
  }
  func.func @transform_5(%arg0: i32) -> (i32, i32) {
    %c0_i32 = arith.constant 0 : i32
    %c0_i32_0 = arith.constant 0 : i32
    %c0_i32_1 = arith.constant 0 : i32
    return %c0_i32, %c0_i32_0 : i32, i32
  }
  func.func @transform_6(%arg0: i32) -> (i32, i32) {
    %c0_i32 = arith.constant 0 : i32
    %c0_i32_0 = arith.constant 0 : i32
    %c0_i32_1 = arith.constant 0 : i32
    return %c0_i32, %c0_i32_0 : i32, i32
  }
  func.func @transform_7(%arg0: i32) -> (i32, i32) {
    %c0_i32 = arith.constant 0 : i32
    %c0_i32_0 = arith.constant 0 : i32
    %c0_i32_1 = arith.constant 0 : i32
    return %c0_i32, %c0_i32_0 : i32, i32
  }
  func.func @transform_8(%arg0: i32) -> (i32, i32) {
    %c0_i32 = arith.constant 0 : i32
    %c0_i32_0 = arith.constant 0 : i32
    %c0_i32_1 = arith.constant 0 : i32
    return %c0_i32, %c0_i32_0 : i32, i32
  }
  func.func @transform_9(%arg0: i32) -> (i32, i32) {
    %c0_i32 = arith.constant 0 : i32
    %c0_i32_0 = arith.constant 0 : i32
    %c0_i32_1 = arith.constant 0 : i32
    return %c0_i32, %c0_i32_0 : i32, i32
  }
  func.func @transform_10(%arg0: i32) -> (i32, i32) {
    %c0_i32 = arith.constant 0 : i32
    %c0_i32_0 = arith.constant 0 : i32
    %c0_i32_1 = arith.constant 0 : i32
    return %c0_i32, %c0_i32_0 : i32, i32
  }
  func.func @transform_11(%arg0: i32) -> (i32, i32) {
    %c0_i32 = arith.constant 0 : i32
    %c0_i32_0 = arith.constant 0 : i32
    %c0_i32_1 = arith.constant 0 : i32
    return %c0_i32, %c0_i32_0 : i32, i32
  }
  func.func @transform_12(%arg0: i32) -> (i32, i32) {
    %c0_i32 = arith.constant 0 : i32
    %c0_i32_0 = arith.constant 0 : i32
    %c0_i32_1 = arith.constant 0 : i32
    return %c0_i32, %c0_i32_0 : i32, i32
  }
  func.func @transform_13(%arg0: i32) -> (i32, i32) {
    %c0_i32 = arith.constant 0 : i32
    %c0_i32_0 = arith.constant 0 : i32
    %c0_i32_1 = arith.constant 0 : i32
    return %c0_i32, %c0_i32_0 : i32, i32
  }
  func.func @transform_14(%arg0: i32) -> (i32, i32) {
    %c0_i32 = arith.constant 0 : i32
    %c0_i32_0 = arith.constant 0 : i32
    %c0_i32_1 = arith.constant 0 : i32
    return %c0_i32, %c0_i32_0 : i32, i32
  }
  func.func @transform_15(%arg0: i32) -> (i32, i32) {
    %c0_i32 = arith.constant 0 : i32
    %c0_i32_0 = arith.constant 0 : i32
    %c0_i32_1 = arith.constant 0 : i32
    return %c0_i32, %c0_i32_0 : i32, i32
  }
  func.func @transform_16(%arg0: i32) -> (i32, i32, i32) {
    %c0_i32 = arith.constant 0 : i32
    %c0_i32_0 = arith.constant 0 : i32
    %c0_i32_1 = arith.constant 0 : i32
    return %arg0, %c0_i32, %c0_i32_0 : i32, i32, i32
  }
  func.func @transform_17(%arg0: i32) -> (i32, i32, i32) {
    %c0_i32 = arith.constant 0 : i32
    %c0_i32_0 = arith.constant 0 : i32
    %c0_i32_1 = arith.constant 0 : i32
    return %arg0, %c0_i32, %c0_i32_0 : i32, i32, i32
  }
  func.func @transform_18(%arg0: i32) -> (i32, i32, i32) {
    %c0_i32 = arith.constant 0 : i32
    %c0_i32_0 = arith.constant 0 : i32
    %c0_i32_1 = arith.constant 0 : i32
    return %arg0, %c0_i32, %c0_i32_0 : i32, i32, i32
  }
}

</mosaic_0001>

<bundles_post_ra>
// kernel: downblock_forward.1
= control target key start
LH: loop header
LB: loop body
LE: loop exit
PB: predicated region body
PF: predicated region fallthrough
CT: control target
= control target key end

     0   :  { %s3463_s27 = smov 0   ;;  %s4779_s0 = inlined_call_operand.vmem [shape: f32[2,4,256], index: 0, kind: input, shape index: {}]   ;;  %s4780_s1 = inlined_call_operand.vmem [shape: bf16[8,4], index: 1, kind: input, shape index: {}]   ;;  %s4781_s2 = inlined_call_operand.vmem [shape: f32[8,1], index: 2, kind: input, shape index: {}]   ;;  %s4782_s3 = inlined_call_operand.vmem [shape: bf16[8,36], index: 3, kind: input, shape index: {}]   ;;  %s4783_s4 = inlined_call_operand.vmem [shape: f32[8,1], index: 4, kind: input, shape index: {}]   ;;  %s4784_s5 = inlined_call_operand.vmem [shape: f32[8,1], index: 5, kind: input, shape index: {}]   ;;  %s4785_s6 = inlined_call_operand.vmem [shape: bf16[8,72], index: 6, kind: input, shape index: {}]   ;;  %s4786_s7 = inlined_call_operand.vmem [shape: f32[8,1], index: 7, kind: input, shape index: {}]   ;;  %s4787_s8 = inlined_call_operand.vmem [shape: f32[8,1], index: 8, kind: input, shape index: {}]   ;;  %s4788_s9 = inlined_call_operand.vmem [shape: bf16[8,72], index: 9, kind: input, shape index: {}]   ;;  %s4789_s10 = inlined_call_operand.vmem [shape: f32[8,1], index: 10, kind: input, shape index: {}]   ;;  %s4790_s11 = inlined_call_operand.vmem [shape: f32[8,1], index: 11, kind: input, shape index: {}]   ;;  %s4791_s12 = inlined_call_operand.vmem [shape: bf16[8,72], index: 12, kind: input, shape index: {}]   ;;  %s4792_s13 = inlined_call_operand.vmem [shape: f32[8,1], index: 13, kind: input, shape index: {}]   ;;  %s4793_s14 = inlined_call_operand.vmem [shape: f32[8,1], index: 14, kind: input, shape index: {}]   ;;  %s4794_s15 = inlined_call_operand.vmem [shape: f32[256,64], index: 15, kind: input, shape index: {}]   ;;  %s4795_s16 = inlined_call_operand.vmem [shape: f32[2,8,256], index: 16, kind: output, shape index: {0}]   ;;  %s4796_s17 = inlined_call_operand.vmem [shape: f32[2,8,256], index: 17, kind: output, shape index: {1}]   ;;  %s4797_s18 = inlined_call_operand.vmem [shape: f32[2,8,64], index: 18, kind: output, shape index: {2}]  }
   0x1   :  { %4874 = sst [smem:[#allocation22_spill]] %s4779_s0 }
   0x2   :  { %4875 = sst [smem:[#allocation23_spill]] %s4780_s1 }
   0x3   :  { %4876 = sst [smem:[#allocation24_spill]] %s4781_s2 }
   0x4 LB: > { %s2785_s28 = sadd.s32 4294967295, %s3354_s27   ;;  %p2789_p0 = scmp.ge.s32.totalorder %s3354_s27, 1  ;;  %s3354_s27 = sphi %s3463_s27, %s29_s27  }
   0x5   : > { %p517_p1 = scmp.lt.s32.totalorder %s3354_s27, 3 }
   0x7   : > { %p518_p2 = pnand %p2789_p0, %p517_p1 }
   0x9   : > { %521 = sbr.rel (%p518_p2) target bundleno = 2094 (0x82e), region = 84 }
  0x10   : > { %p580_p3 = scmp.lt.s32.totalorder %s2785_s28, 1  ;;  %vm4803_vm0 = vcmask 146432   ;;  %v3356_v0 = vmov 0.0   ;;  %s4877_s19 = sld [smem:[#allocation22_spill]]  ;;  %vm653_vm1 = vcmask 1041408   ;;  %v3362_v12 = vmov 0  }
  0x11   : > { %631 = vst [vmem:[#allocation2] sm:$0xff] %v3356_v0  ;;  %632 = vst [vmem:[#allocation2 + $0x8] sm:$0xff] %v3356_v0  ;;  %s4816_s20 = smov 1   ;;  %s4818_s21 = smov 15   ;;  %692 = vmatprep.mubr.bf16.mxu1 %v3362_v12  ;;  %vm649_vm2 = vcmask 31744   ;;  %3241 = vset.pattern.permute.xlu0 %v3362_v12  ;;  %v921_v16 = vld [vmem:[%s4783_s4] sm:$0xff]  ;;  %v600_v18 = vlaneseq }
  0x12   : > { %633 = vst [vmem:[#allocation2 + $0x10] sm:$0xff] %v3356_v0  ;;  %635 = vst.msk [vmem:[#allocation2 + $0x18] sm:$0xff] %vm4803_vm0, %v3356_v0  ;;  %s5026_s28 = smov (!%p580_p3, %s2785_s28), 1  ;;  %s3359_s22 = smov 17   ;;  %3242 = vset.pattern.permute.xlu1 %v3362_v12  ;;  %1143 = vmatprep.mubr.bf16.mxu0 %v3362_v12  ;;  %v929_v17 = vld [vmem:[%s4784_s5] sm:$0xff]  ;;  %vm4804_vm3 = vcmask 7168  }
  0x13   : > { %s4798_s29 = sshll.u32 %s5026_s28, 3  ;;  %s3360_s2 = smov 16   ;;  %v601_v19 = vand.u32 127, %v600_v18  ;;  %vm4811_vm5 = vcmask 138240   ;;  %vm4810_vm7 = vcmask 121856   ;;  %vm808_vm10 = vcmask 130048  }
  0x14   : > { %s4801_s23 = smov 127   ;;  %s4878_s26 = sld [smem:[#allocation23_spill]]  ;;  %vm4805_vm11 = vcmask 1039360   ;;  %vm4806_vm12 = vcmask 924672   ;;  %vm844_vm13 = vcmask 916480   ;;  %vm4807_vm14 = vcmask 908288  }
  0x15   : > { %s4814_s30 = smov 113   ;;  %s4799_s0 = smov 112   ;;  %v607_v22 = vand.u32 15, %v601_v19  ;;  %v602_v23 = vadd.s32 128, %v601_v19  ;;  %vm870_vm15 = vcmask 293888  }
  0x16   : > { %s584_s1 = scalar_lea.vmem %s4877_s19, %s4798_s29  ;;  %s4812_s19 = smov 111  }
  0x17   : > { %v636_v1 = vld [vmem:[%s584_s1] sm:$0xff]  ;;  %vm3532_vm4 = vcmp.ne.s32.totalorder %v607_v22, 0  ;;  %v614_v26 = vand.u32 15, %v602_v23  ;;  %vm3547_vm8 = vcmp.ne.s32.totalorder %v607_v22, 15  ;;  %s4888_s25 = smov 127  }
  0x18   : > { %v639_v2 = vcombine.high %v636_v1, %v636_v1  ;;  %701 = vst [vmem:[#allocation2 + $0x8] sm:$0xf] %v636_v1  ;;  %v703_v3 = vld [vmem:[#allocation2] sm:$0xf]  ;;  %v641_v8 = vpack.c.bf16 %v636_v1, %v636_v1 }
  0x19   : > { %743 = vrot.lane.b32.xlu1 %v703_v3, %s4816_s20  ;;  %730 = vrot.lane.b32.xlu0 %v703_v3, %s4818_s21  ;;  %v799_v11 = vrot.slane %v703_v3, 4  ;;  %v756_v14 = vld [vmem:[#allocation2 + $0x18] sm:$0xf]  ;;  %vm3540_vm6 = vcmp.ne.s32.totalorder %v614_v26, 0  ;;  %vm3559_vm9 = vcmp.ne.s32.totalorder %v614_v26, 15 }
  0x1a   : > { %702 = vst [vmem:[#allocation2 + $0x10] sm:$0xf] %v639_v2  ;;  %v642_v7 = vpack.c.bf16 %v639_v2, %v639_v2  ;;  %v655_v9 = vsel %vm653_vm1, %v641_v8, 0  ;;  %v637_v13 = vld [vmem:[%s4878_s26] sm:$0xf]  ;;  %v837_v15 = vrot.slane %v756_v14, 4  ;;  %vm3697_vm0 = vmpackc.low %vm3540_vm6, %vm3559_vm9 }
  0x1b   : > { %s4889_s26 = smov 112  }
  0x1c   : > { %2797 = vmatprep.subr.msk.bf16.mxu1 %vm653_vm1, %v642_v7 }
  0x1d   : > { %713 = vrot.lane.b32.xlu1 %v703_v3, %s3359_s22  ;;  %661 = vmatpush1.bf16.msra.mxu1 %v655_v9 }
  0x1f   : > { %v704_v4 = vld [vmem:[#allocation2 + $0x8] sm:$0xf] }
  0x20   : > { %745 = vrot.lane.b32.xlu0 %v704_v4, %s4816_s20  ;;  %825 = vst [vmem:[#allocation3 + $0x20] sm:$0xf] %v704_v4  ;;  %v800_v6 = vrot.slane %v704_v4, 4  ;;  %2798 = vmatmul.mubr.msk.bf16.vlgmr.msra.gmra.mrb[0].mxu1 %vm649_vm2, %v637_v13 }
  0x21   : > { %v705_v5 = vld [vmem:[#allocation2 + $0x10] sm:$0xf]  ;;  %715 = vrot.lane.b32.xlu1 %v704_v4, %s3359_s22  ;;  %912 = vmatprep.mubr.bf16.mxu1 %v3362_v12 }
  0x22   : > { %826 = vst [vmem:[#allocation3 + $0x28] sm:$0xf] %v705_v5  ;;  %v801_v10 = vrot.slane %v705_v5, 4 }
  0x24   : > { %747 = vrot.lane.b32.xlu0 %v705_v5, %s4816_s20 }
  0x25   : > { %732 = vrot.lane.b32.xlu1 %v704_v4, %s4818_s21 }
  0x28   : > { %717 = vrot.lane.b32.xlu0 %v705_v5, %s3359_s22 }
  0x29   : > { %804 = vrot.lane.b32.xlu1 %v800_v6, %s3360_s2 }
  0x2c   : > { %734 = vrot.lane.b32.xlu0 %v705_v5, %s4818_s21 }
  0x2d   : > { %760 = vrot.lane.b32.xlu1 %v705_v5, %s4801_s23 }
  0x30   : > { %806 = vrot.lane.b32.xlu0 %v801_v10, %s3360_s2 }
  0x31   : > { %802 = vrot.lane.b32.xlu1 %v799_v11, %s3360_s2 }
  0x34   : > { %762 = vrot.lane.b32.xlu0 %v756_v14, %s4801_s23 }
  0x35   : > { %773 = vrot.lane.b32.xlu1 %v705_v5, %s4814_s30 }
  0x38   : > { %758 = vrot.lane.b32.xlu0 %v704_v4, %s4801_s23 }
  0x39   : > { %771 = vrot.lane.b32.xlu1 %v704_v4, %s4814_s30 }
  0x3c   : > { %775 = vrot.lane.b32.xlu0 %v756_v14, %s4814_s30 }
  0x3d   : > { %842 = vrot.lane.b32.xlu1 %v837_v15, %s4799_s0 }
  0x40   : > { %840 = vrot.lane.b32.xlu0 %v801_v10, %s4799_s0 }
  0x41   : > { %784 = vrot.lane.b32.xlu1 %v704_v4, %s4812_s19 }
  0x44   : > { %838 = vrot.lane.b32.xlu0 %v800_v6, %s4799_s0 }
  0x45   : > { %788 = vrot.lane.b32.xlu1 %v756_v14, %s4812_s19 }
  0x48   : > { %786 = vrot.lane.b32.xlu0 %v705_v5, %s4812_s19 }
  0x49   : > { %932 = vperm.xlu1 %3242, %v929_v17  }
  0x4c   : > { %924 = vperm.xlu0 %3241, %v921_v16  }
  0x4d   : > { %959 = vrot.lane.b32.xlu1 %v3356_v0, %s3359_s22 }
  0x50   : > { %1035 = vrot.lane.b32.xlu0 %v3356_v0, %s3360_s2 }
  0x51   : > { %971 = vrot.lane.b32.xlu1 %v3356_v0, %s4818_s21 }
  0x54   : > { %983 = vrot.lane.b32.xlu0 %v3356_v0, %s4816_s20 }
  0x8b   : > { %v744_v20 = vpop.permute.xlu1 %743  ;;  %v731_v21 = vpop.permute.xlu0 %730 }
  0x8f   : > { %v714_v24 = vpop.permute.xlu1 %713 }
  0x92   : > { %v746_v27 = vpop.permute.xlu0 %745 }
  0x93   : > { %v750_v28 = vsel %vm4804_vm3, %v744_v20, %v746_v27  ;;  %v716_v30 = vpop.permute.xlu1 %715 }
  0x94   : > { %v754_v29 = vsel %vm3532_vm4, %v750_v28, 0.0  ;;  %v720_v32 = vsel %vm4811_vm5, %v714_v24, %v716_v30 }
  0x95   : > { %v819_v31 = vrot.slane %v754_v29, 4  ;;  %v724_v34 = vsel %vm3532_vm4, %v720_v32, 0.0 }
  0x96   : > { %v748_v35 = vpop.permute.xlu0 %747  ;;  %797 = vst [vmem:[#allocation3] sm:$0xf] %v724_v34 }
  0x97   : > { %823 = vst [vmem:[#allocation3 + $0x10] sm:$0xf0] %v819_v31  ;;  %v751_v36 = vsel %vm4804_vm3, %v746_v27, %v748_v35  ;;  %v733_v39 = vpop.permute.xlu1 %732 }
  0x98   : > { %v755_v38 = vsel %vm3540_vm6, %v751_v36, 0.0  ;;  %v737_v41 = vsel %vm4810_vm7, %v731_v21, %v733_v39 }
  0x99   : > { %v820_v40 = vrot.slane %v755_v38, 4  ;;  %v741_v42 = vsel %vm3547_vm8, %v737_v41, 0.0  ;;  %v869_v41 = vld [vmem:[%s4782_s3] sm:$0xf] }
  0x9a   : > { %v718_v43 = vpop.permute.xlu0 %717  ;;  %815 = vst [vmem:[#allocation3 + $0x10] sm:$0xf] %v741_v42 }
  0x9b   : > { %824 = vst [vmem:[#allocation3 + $0x18] sm:$0xf0] %v820_v40  ;;  %v721_v44 = vsel %vm4811_vm5, %v716_v30, %v718_v43  ;;  %v805_v46 = vpop.permute.xlu1 %804 }
  0x9c   : > { %v725_v45 = vsel %vm3540_vm6, %v721_v44, 0.0 }
  0x9d   : > { %798 = vst [vmem:[#allocation3 + $0x8] sm:$0xf] %v725_v45 }
  0x9e   : > { %v735_v48 = vpop.permute.xlu0 %734 }
  0x9f   : > { %v738_v49 = vsel %vm4810_vm7, %v733_v39, %v735_v48  ;;  %v761_v51 = vpop.permute.xlu1 %760 }
  0xa0   : > { %v742_v50 = vsel %vm3559_vm9, %v738_v49, 0.0 }
  0xa1   : > { %816 = vst [vmem:[#allocation3 + $0x18] sm:$0xf] %v742_v50  ;;  %v855_v8 = vld [vmem:[#allocation3 + $0x10] sm:$0xff] }
  0xa2   : > { %v807_v52 = vpop.permute.xlu0 %806 }
  0xa3   : > { %v810_v53 = vsel %vm808_vm10, %v805_v46, %v807_v52  ;;  %v803_v54 = vpop.permute.xlu1 %802 }
  0xa4   : > { %814 = vst [vmem:[#allocation3 + $0x8] sm:$0xf0] %v810_v53  ;;  %v809_v55 = vsel %vm808_vm10, %v803_v54, %v805_v46  ;;  %v3598_v46 = vld [vmem:[#allocation2 + $0x18] sm:$0xff] }
  0xa5   : > { %813 = vst [vmem:[#allocation3] sm:$0xf0] %v809_v55  ;;  %1001 = vrot.lane.b32.xlu0 %v3598_v46, %s4801_s23  ;;  %1013 = vrot.lane.b32.xlu1 %v3598_v46, %s4814_s30 }
  0xa6   : > { %v763_v56 = vpop.permute.xlu0 %762 }
  0xa7   : > { %v766_v57 = vsel %vm4805_vm11, %v761_v51, %v763_v56  ;;  %v774_v59 = vpop.permute.xlu1 %773 }
  0xa8   : > { %v770_v58 = vsel %vm3559_vm9, %v766_v57, 0.0  ;;  %v856_v1 = vld [vmem:[#allocation3 + $0x18] sm:$0xff] }
  0xa9   : > { %v830_v60 = vrot.slane %v770_v58, 4  ;;  %1061 = vrot.lane.b32.xlu0 %v3598_v46, %s4799_s0 }
  0xaa   : > { %v759_v61 = vpop.permute.xlu0 %758 }
  0xab   : > { %834 = vst [vmem:[#allocation3 + $0x28] sm:$0xf0] %v830_v60  ;;  %v765_v62 = vsel %vm4805_vm11, %v759_v61, %v761_v51  ;;  %v854_v63 = vld [vmem:[#allocation3 + $0x8] sm:$0xff]  ;;  %v772_v3 = vpop.permute.xlu1 %771 }
  0xac   : > { %v769_v2 = vsel %vm3547_vm8, %v765_v62, 0.0  ;;  %v864_v4 = vpack.c.bf16 %v856_v1, %v854_v63  ;;  %v778_v6 = vsel %vm4806_vm12, %v772_v3, %v774_v59  ;;  %v853_v7 = vld [vmem:[#allocation3] sm:$0xff] }
  0xad   : > { %v829_v5 = vrot.slane %v769_v2, 4  ;;  %v782_v9 = vsel %vm3532_vm4, %v778_v6, 0.0  ;;  %v863_v11 = vpack.c.bf16 %v855_v8, %v853_v7  ;;  %v1152_v6 = vld [vmem:[%s4786_s7] sm:$0xff] }
  0xae   : > { %v776_v10 = vpop.permute.xlu0 %775  ;;  %880 = vmatprep.subr.bf16.mxu1 %v864_v4  ;;  %835 = vst [vmem:[#allocation3 + $0x30] sm:$0xf] %v782_v9 }
  0xaf   : > { %833 = vst [vmem:[#allocation3 + $0x20] sm:$0xf0] %v829_v5  ;;  %v779_v13 = vsel %vm4806_vm12, %v774_v59, %v776_v10  ;;  %881 = vmatpush1.bf16.msra.mxu1 %v863_v11  ;;  %v843_v15 = vpop.permute.xlu1 %842  ;;  %v1160_v5 = vld [vmem:[%s4787_s8] sm:$0xff] }
  0xb0   : > { %v783_v14 = vsel %vm3540_vm6, %v779_v13, 0.0 }
  0xb1   : > { %836 = vst [vmem:[#allocation3 + $0x38] sm:$0xf] %v783_v14 }
  0xb2   : > { %v841_v16 = vpop.permute.xlu0 %840  ;;  %v858_v26 = vld [vmem:[#allocation3 + $0x28] sm:$0xff] }
  0xb3   : > { %v846_v17 = vsel %vm844_vm13, %v841_v16, %v843_v15  ;;  %v785_v18 = vpop.permute.xlu1 %784 }
  0xb4   : > { %850 = vst [vmem:[#allocation3 + $0x38] sm:$0xf0] %v846_v17 }
  0xb6   : > { %v839_v19 = vpop.permute.xlu0 %838  ;;  %v857_v31 = vld [vmem:[#allocation3 + $0x20] sm:$0xff] }
  0xb7   : > { %v845_v20 = vsel %vm844_vm13, %v839_v19, %v841_v16  ;;  %v789_v21 = vpop.permute.xlu1 %788 }
  0xb8   : > { %849 = vst [vmem:[#allocation3 + $0x30] sm:$0xf0] %v845_v20 }
  0xba   : > { %v787_v22 = vpop.permute.xlu0 %786 }
  0xbb   : > { %v791_v23 = vsel %vm4807_vm14, %v785_v18, %v787_v22  ;;  %v792_v24 = vsel %vm4807_vm14, %v787_v22, %v789_v21  ;;  %v860_v27 = vld [vmem:[#allocation3 + $0x38] sm:$0xff] }
  0xbc   : > { %v795_v28 = vsel %vm3547_vm8, %v791_v23, 0.0  ;;  %v796_v29 = vsel %vm3559_vm9, %v792_v24, 0.0  ;;  %v866_v30 = vpack.c.bf16 %v860_v27, %v858_v26 }
  0xbd   : > { %851 = vst [vmem:[#allocation3 + $0x40] sm:$0xf] %v795_v28  ;;  %852 = vst [vmem:[#allocation3 + $0x48] sm:$0xf] %v796_v29 }
  0xbe   : > { %882 = vmatprep.subr.bf16.mxu1 %v866_v30 }
  0xbf   : > { %v859_v32 = vld [vmem:[#allocation3 + $0x30] sm:$0xff] }
  0xc0   : > { %v865_v34 = vpack.c.bf16 %v859_v32, %v857_v31 }
  0xc2   : > { %883 = vmatpush1.bf16.msra.mxu1 %v865_v34 }
  0xc4   : > { %v862_v35 = vld [vmem:[#allocation3 + $0x48] sm:$0xf]  ;;  %v861_v36 = vld [vmem:[#allocation3 + $0x40] sm:$0xf] }
  0xc5   : > { %v868_v38 = vpack.c.bf16 %v862_v35, %v862_v35  ;;  %v867_v39 = vpack.c.bf16 %v861_v36, %v861_v36 }
  0xc7   : > { %2799 = vmatprep.subr.msk.bf16.mxu1 %vm653_vm1, %v868_v38  ;;  %v875_v40 = vsel %vm653_vm1, %v867_v39, 0  ;;  %vm3366_vm1 = vmmov 1  }
  0xc8   : > { %885 = vmatpush1.bf16.msra.mxu1 %v875_v40  ;;  %v933_v50 = vpop.permute.xlu1 %932  ;;  %vm3678_vm2 = vmpackc.low %vm3366_vm1, %vm3540_vm6 }
  0xcb   : > { %2800 = vmatmul.mubr.msk.bf16.vlgmr.msra.gmra.mrb[4].mxu1 %vm870_vm15, %v869_v41  ;;  %v925_v48 = vpop.permute.xlu0 %924  ;;  %vm3687_vm15 = vmpackc.low %vm3366_vm1, %vm3532_vm4 }
  0xcc   : > { %1376 = vmatprep.mubr.bf16.mxu1 %v3362_v12  ;;  %v960_v9 = vpop.permute.xlu1 %959 }
  0xcf   : > { %v1036_v8 = vpop.permute.xlu0 %1035 }
  0xd0   : > { %v972_v11 = vpop.permute.xlu1 %971 }
  0xd3   : > { %v984_v10 = vpop.permute.xlu0 %983 }
  0xf3   : > { %v3594_v42 = vpop.f32.mrb[0].mxu1 }
  0xf4   : > { %v3596_v43 = vpop.f32.mrb[1].mxu1 }
  0xf5   : > { %v698_v44 = vpop.f32.mrb[2].mxu1 }
  0xf6   : > { %v699_v45 = vpop.f32.mrb[3].mxu1 }
 0x117   : > { %v1002_v13 = vpop.permute.xlu0 %1001  ;;  %v1014_v14 = vpop.permute.xlu1 %1013 }
 0x11b   : > { %v1062_v15 = vpop.permute.xlu0 %1061 }
 0x19e   : > { %v914_v49 = vpop.f32.mrb[4].mxu1 }
 0x19f   : > { %v927_v51 = vmul.f32 %v925_v48, %v914_v49  ;;  %v916_v52 = vpop.f32.mrb[5].mxu1 }
 0x1a0   : > { %v928_v53 = vmul.f32 %v925_v48, %v916_v52  ;;  %v918_v54 = vpop.f32.mrb[6].mxu1 }
 0x1a1   : > { %v935_v55 = vadd.f32 %v933_v50, %v927_v51  ;;  %v919_v56 = vpop.f32.mrb[7].mxu1 }
 0x1a2   : > { %v936_v57 = vadd.f32 %v933_v50, %v928_v53 }
 0x1a3   : > { %v2801_v58 = vmul.f32 -1.442695, %v935_v55 }
 0x1a4   : > { %v2802_v59 = vmul.f32 -1.442695, %v936_v57 }
 0x1a5   : > { %3244 = vpow2.f32 %v2801_v58 }
 0x1a6   : > { %3246 = vpow2.f32 %v2802_v59 }
 0x1af   : > { %v3245_v60 = vpop.eup %3244 }
 0x1b0   : > { %v943_v61 = vadd.f32 1.0, %v3245_v60  ;;  %v3247_v62 = vpop.eup %3246 }
 0x1b1   : > { %v944_v63 = vadd.f32 1.0, %v3247_v62 }
 0x1b2   : > { %3248 = vrcp.f32 %v943_v61 }
 0x1b3   : > { %3250 = vrcp.f32 %v944_v63 }
 0x1bc   : > { %v3249_v1 = vpop.eup %3248 }
 0x1bd   : > { %v3606_v2 = vmul.f32 %v3249_v1, %v935_v55  ;;  %v3251_v3 = vpop.eup %3250 }
 0x1be   : > { %v3616_v4 = vmul.f32 %v3251_v3, %v936_v57 }
 0x1bf   : > { %1037 = vrot.lane.b32.xlu0 %v3606_v2, %s3360_s2  ;;  %961 = vrot.lane.b32.xlu1 %v3606_v2, %s3359_s22 }
 0x1c3   : > { %1009 = vrot.lane.b32.xlu0 %v3606_v2, %s4814_s30  ;;  %973 = vrot.lane.b32.xlu1 %v3606_v2, %s4818_s21 }
 0x1c7   : > { %985 = vrot.lane.b32.xlu1 %v3606_v2, %s4816_s20  ;;  %963 = vrot.lane.b32.xlu0 %v3616_v4, %s3359_s22 }
 0x1cb   : > { %997 = vrot.lane.b32.xlu1 %v3606_v2, %s4801_s23  ;;  %975 = vrot.lane.b32.xlu0 %v3616_v4, %s4818_s21 }
 0x1cf   : > { %1039 = vrot.lane.b32.xlu1 %v3616_v4, %s3360_s2  ;;  %987 = vrot.lane.b32.xlu0 %v3616_v4, %s4816_s20 }
 0x1d3   : > { %1057 = vrot.lane.b32.xlu1 %v3606_v2, %s4799_s0  ;;  %1021 = vrot.lane.b32.xlu0 %v3606_v2, %s4812_s19 }
 0x1d7   : > { %999 = vrot.lane.b32.xlu1 %v3616_v4, %s4801_s23  ;;  %1011 = vrot.lane.b32.xlu0 %v3616_v4, %s4814_s30  ;;  %s4887_s23 = sld [smem:[#allocation24_spill]] }
 0x1db   : > { %1059 = vrot.lane.b32.xlu1 %v3616_v4, %s4799_s0  ;;  %1025 = vrot.lane.b32.xlu0 %v3598_v46, %s4812_s19  ;;  %s2818_s0 = sshll.u32 %s5026_s28, 4 }
 0x1dc   : > { %s589_s29 = scalar_lea.vmem %s4795_s16, %s2818_s0  ;;  %s594_s24 = scalar_lea.vmem %s4796_s17, %s2818_s0 }
 0x1dd   : > { %v643_v7 = vld [vmem:[%s4887_s23] sm:$0xff]  ;;  %s4934_s23 = smov 1  }
 0x1df   : > { %1023 = vrot.lane.b32.xlu1 %v3616_v4, %s4812_s19  ;;  %1163 = vperm.xlu0 %3241, %v1160_v5  }
 0x1e3   : > { %1155 = vperm.xlu1 %3242, %v1152_v6   ;;  %1194 = vrot.lane.b32.xlu0 %v3356_v0, %s3359_s22 }
 0x1e7   : > { %646 = vperm.xlu1 %3242, %v643_v7   ;;  %1206 = vrot.lane.b32.xlu0 %v3356_v0, %s4818_s21 }
 0x1eb   : > { %1270 = vrot.lane.b32.xlu1 %v3356_v0, %s3360_s2  ;;  %1248 = vrot.lane.b32.xlu0 %v3598_v46, %s4814_s30 }
 0x1ef   : > { %1218 = vrot.lane.b32.xlu1 %v3356_v0, %s4816_s20 }
 0x1f3   : > { %1236 = vrot.lane.b32.xlu1 %v3598_v46, %s4888_s25 }
 0x1f7   : > { %1296 = vrot.lane.b32.xlu1 %v3598_v46, %s4889_s26 }
 0x231   : > { %v1038_v16 = vpop.permute.xlu0 %1037  ;;  %v962_v17 = vpop.permute.xlu1 %961 }
 0x232   : > { %v965_v24 = vsel %vm4811_vm5, %v960_v9, %v962_v17  ;;  %v1041_v28 = vsel %vm808_vm10, %v1036_v8, %v1038_v16 }
 0x233   : > { %v3280_v44 = vpack.c.bf16 %v1041_v28, %v965_v24 }
 0x235   : > { %v1010_v18 = vpop.permute.xlu0 %1009  ;;  %v974_v19 = vpop.permute.xlu1 %973 }
 0x236   : > { %v977_v35 = vsel %vm4810_vm7, %v972_v11, %v974_v19 }
 0x239   : > { %v986_v20 = vpop.permute.xlu1 %985  ;;  %v964_v21 = vpop.permute.xlu0 %963 }
 0x23a   : > { %v966_v26 = vsel %vm4811_vm5, %v962_v17, %v964_v21  ;;  %v989_v31 = vsel %vm4804_vm3, %v984_v10, %v986_v20 }
 0x23b   : > { %v3286_v54 = vpack.c.bf16 %v989_v31, %v977_v35 }
 0x23d   : > { %v998_v22 = vpop.permute.xlu1 %997  ;;  %v976_v23 = vpop.permute.xlu0 %975 }
 0x23e   : > { %v978_v27 = vsel %vm4810_vm7, %v974_v19, %v976_v23 }
 0x241   : > { %v1040_v29 = vpop.permute.xlu1 %1039  ;;  %v988_v30 = vpop.permute.xlu0 %987 }
 0x242   : > { %v1042_v32 = vsel %vm808_vm10, %v1038_v16, %v1040_v29  ;;  %v990_v34 = vsel %vm4804_vm3, %v986_v20, %v988_v30  ;;  %vm3709_vm3 = vmpackc.low %vm3532_vm4, %vm3547_vm8 }
 0x243   : > { %v3277_v40 = vpack.c.bf16 %v1042_v32, %v966_v26  ;;  %v3283_v48 = vpack.c.bf16 %v990_v34, %v978_v27 }
 0x245   : > { %v1058_v36 = vpop.permute.xlu1 %1057  ;;  %v1022_v38 = vpop.permute.xlu0 %1021  ;;  %3278 = vmatprep.subr.msk.bf16.mxu0 %vm3678_vm2, %v3277_v40 }
 0x246   : > { %3281 = vmatpush1.bf16.msk.msra.mxu0 %vm3687_vm15, %v3280_v44 }
 0x247   : > { %3284 = vmatprep.subr.msk.bf16.mxu0 %vm3697_vm0, %v3283_v48 }
 0x249   : > { %v1000_v49 = vpop.permute.xlu1 %999  ;;  %v1012_v50 = vpop.permute.xlu0 %1011 }
 0x24a   : > { %v1003_v51 = vsel %vm4805_vm11, %v998_v22, %v1000_v49  ;;  %v1004_v52 = vsel %vm4805_vm11, %v1000_v49, %v1002_v13  ;;  %3287 = vmatpush1.bf16.msk.msra.mxu0 %vm3709_vm3, %v3286_v54  ;;  %v1016_v55 = vsel %vm4806_vm12, %v1012_v50, %v1014_v14  ;;  %v1015_v56 = vsel %vm4806_vm12, %v1010_v18, %v1012_v50  ;;  %vm3722_vm11 = vmpackc.low %vm3559_vm9, %vm3366_vm1  ;;  %v1099_v13 = vld [vmem:[%s4785_s6] sm:$0xf] }
 0x24b   : > { %v3289_v61 = vpack.c.bf16 %v1004_v52, %v3616_v4  ;;  %vm3732_vm12 = vmpackc.low %vm3547_vm8, %vm3366_vm1  ;;  %v3292_v1 = vpack.c.bf16 %v1003_v51, %v3606_v2  ;;  %vm4809_vm1 = vcmask 1043456  }
 0x24d   : > { %v1060_v57 = vpop.permute.xlu1 %1059  ;;  %3290 = vmatprep.subr.msk.bf16.mxu0 %vm3722_vm11, %v3289_v61  ;;  %v1026_v62 = vpop.permute.xlu0 %1025 }
 0x24e   : > { %v1063_v58 = vsel %vm844_vm13, %v1058_v36, %v1060_v57  ;;  %v1064_v59 = vsel %vm844_vm13, %v1060_v57, %v1062_v15  ;;  %3293 = vmatpush1.bf16.msk.msra.mxu0 %vm3732_vm12, %v3292_v1 }
 0x24f   : > { %v3295_v5 = vpack.c.bf16 %v1064_v59, %v1016_v55  ;;  %v3298_v9 = vpack.c.bf16 %v1063_v58, %v1015_v56 }
 0x251   : > { %v1024_v3 = vpop.permute.xlu1 %1023  ;;  %3296 = vmatprep.subr.msk.bf16.mxu0 %vm3678_vm2, %v3295_v5 }
 0x252   : > { %v1027_v4 = vsel %vm4807_vm14, %v1022_v38, %v1024_v3  ;;  %v1028_v6 = vsel %vm4807_vm14, %v1024_v3, %v1026_v62  ;;  %3299 = vmatpush1.bf16.msk.msra.mxu0 %vm3687_vm15, %v3298_v9  ;;  %vm4808_vm14 = vcmask 588800  }
 0x253   : > { %v1031_v7 = vsel %vm3547_vm8, %v1027_v4, 0.0  ;;  %v1032_v8 = vsel %vm3559_vm9, %v1028_v6, 0.0 }
 0x254   : > { %v1098_v2 = vpack.c.bf16 %v1032_v8, %v1032_v8  ;;  %v1097_v10 = vpack.c.bf16 %v1031_v7, %v1031_v7 }
 0x256   : > { %2803 = vmatprep.subr.msk.bf16.mxu0 %vm4809_vm1, %v1098_v2  ;;  %v1106_v11 = vsel %vm4809_vm1, %v1097_v10, 0 }
 0x257   : > { %1120 = vmatpush1.bf16.msra.mxu0 %v1106_v11 }
 0x25a   : > { %2804 = vmatmul.mubr.msk.bf16.vlgmr.msra.gmra.mrb[0].mxu0 %vm4808_vm14, %v1099_v13  ;;  %vm4902_vm14 = vcmask 7168  }
 0x25b   : > { %1605 = vmatprep.mubr.bf16.mxu0 %v3362_v12  ;;  %vm4903_vm1 = vmmov %vm4902_vm14 }
 0x25e   : > { %v1164_v18 = vpop.permute.xlu0 %1163 }
 0x262   : > { %v1156_v14 = vpop.permute.xlu1 %1155  ;;  %v1195_v50 = vpop.permute.xlu0 %1194 }
 0x266   : > { %v647_v30 = vpop.permute.xlu1 %646  ;;  %v1207_v52 = vpop.permute.xlu0 %1206 }
 0x267   : > { %v695_v34 = vadd.f32 %v3594_v42, %v647_v30  ;;  %v697_v36 = vadd.f32 %v3596_v43, %v647_v30  ;;  %v1393_v42 = vld [vmem:[%s4790_s11] sm:$0xff] }
 0x268   : > { %v1385_v43 = vld [vmem:[%s4789_s10] sm:$0xff] }
 0x26a   : > { %v1271_v48 = vpop.permute.xlu1 %1270  ;;  %v1249_v55 = vpop.permute.xlu0 %1248 }
 0x26e   : > { %v1219_v49 = vpop.permute.xlu1 %1218 }
 0x272   : > { %v1237_v51 = vpop.permute.xlu1 %1236 }
 0x276   : > { %v1297_v54 = vpop.permute.xlu1 %1296 }
 0x32d   : > { %v1145_v15 = vpop.f32.mrb[0].mxu0 }
 0x32e   : > { %v1158_v16 = vmul.f32 %v1156_v14, %v1145_v15  ;;  %v1147_v17 = vpop.f32.mrb[1].mxu0 }
 0x32f   : > { %v1159_v19 = vmul.f32 %v1156_v14, %v1147_v17  ;;  %v1149_v20 = vpop.f32.mrb[2].mxu0 }
 0x330   : > { %v1166_v21 = vadd.f32 %v1164_v18, %v1158_v16  ;;  %v1150_v22 = vpop.f32.mrb[3].mxu0 }
 0x331   : > { %v1167_v23 = vadd.f32 %v1164_v18, %v1159_v19 }
 0x332   : > { %v2805_v24 = vmul.f32 -1.442695, %v1166_v21 }
 0x333   : > { %v2806_v26 = vmul.f32 -1.442695, %v1167_v23 }
 0x334   : > { %3252 = vpow2.f32 %v2805_v24 }
 0x335   : > { %3254 = vpow2.f32 %v2806_v26 }
 0x33e   : > { %v3253_v27 = vpop.eup %3252 }
 0x33f   : > { %v3255_v28 = vpop.eup %3254  ;;  %v1174_v29 = vadd.f32 1.0, %v3253_v27 }
 0x340   : > { %v1175_v12 = vadd.f32 1.0, %v3255_v28 }
 0x341   : > { %3256 = vrcp.f32 %v1174_v29 }
 0x342   : > { %3258 = vrcp.f32 %v1175_v12 }
 0x34b   : > { %v3257_v31 = vpop.eup %3256 }
 0x34c   : > { %v3259_v32 = vpop.eup %3258  ;;  %v1180_v35 = vmul.f32 %v3257_v31, %v1166_v21 }
 0x34d   : > { %v1181_v38 = vmul.f32 %v3259_v32, %v1167_v23 }
 0x34e   : > { %v3764_v40 = vadd.f32 %v1180_v35, %v695_v34 }
 0x34f   : > { %v3766_v44 = vadd.f32 %v1181_v38, %v697_v36 }
 0x350   : > { %1272 = vrot.lane.b32.xlu1 %v3764_v40, %s3360_s2  ;;  %1196 = vrot.lane.b32.xlu0 %v3764_v40, %s3359_s22  ;;  %1184 = vst [vmem:[%s589_s29] sm:$0xff] %v3764_v40 }
 0x351   : > { %1185 = vst [vmem:[%s589_s29 + $0x8] sm:$0xff] %v3766_v44  ;;  %s4931_s29 = smov 15  }
 0x354   : > { %1244 = vrot.lane.b32.xlu1 %v3764_v40, %s4814_s30  ;;  %1208 = vrot.lane.b32.xlu0 %v3764_v40, %s4818_s21 }
 0x358   : > { %1220 = vrot.lane.b32.xlu0 %v3764_v40, %s4816_s20  ;;  %1198 = vrot.lane.b32.xlu1 %v3766_v44, %s3359_s22 }
 0x35c   : > { %1232 = vrot.lane.b32.xlu0 %v3764_v40, %s4888_s25  ;;  %1210 = vrot.lane.b32.xlu1 %v3766_v44, %s4818_s21 }
 0x360   : > { %1274 = vrot.lane.b32.xlu0 %v3766_v44, %s3360_s2  ;;  %1222 = vrot.lane.b32.xlu1 %v3766_v44, %s4816_s20 }
 0x364   : > { %1292 = vrot.lane.b32.xlu0 %v3764_v40, %s4889_s26  ;;  %1256 = vrot.lane.b32.xlu1 %v3764_v40, %s4812_s19 }
 0x368   : > { %1234 = vrot.lane.b32.xlu0 %v3766_v44, %s4888_s25  ;;  %1246 = vrot.lane.b32.xlu1 %v3766_v44, %s4814_s30 }
 0x36c   : > { %1294 = vrot.lane.b32.xlu0 %v3766_v44, %s4889_s26  ;;  %1260 = vrot.lane.b32.xlu1 %v3598_v46, %s4812_s19 }
 0x370   : > { %1258 = vrot.lane.b32.xlu0 %v3766_v44, %s4812_s19  ;;  %1396 = vperm.xlu1 %3242, %v1393_v42  }
 0x374   : > { %1388 = vperm.xlu0 %3241, %v1385_v43   ;;  %1499 = vrot.lane.b32.xlu1 %v3356_v0, %s3360_s2 }
 0x378   : > { %1423 = vrot.lane.b32.xlu0 %v3356_v0, %s3359_s22  ;;  %1447 = vrot.lane.b32.xlu1 %v3356_v0, %s4816_s20 }
 0x37c   : > { %1435 = vrot.lane.b32.xlu0 %v3356_v0, %s4818_s21  ;;  %1465 = vrot.lane.b32.xlu1 %v3598_v46, %s4888_s25 }
 0x380   : > { %1477 = vrot.lane.b32.xlu0 %v3598_v46, %s4814_s30  ;;  %1525 = vrot.lane.b32.xlu1 %v3598_v46, %s4889_s26 }
 0x3c2   : > { %v1273_v56 = vpop.permute.xlu1 %1272  ;;  %v1197_v57 = vpop.permute.xlu0 %1196 }
 0x3c3   : > { %v1200_v3 = vsel %vm4811_vm5, %v1195_v50, %v1197_v57  ;;  %v1276_v6 = vsel %vm808_vm10, %v1271_v48, %v1273_v56  ;;  %v1334_v50 = vld [vmem:[%s4788_s9] sm:$0xf] }
 0x3c4   : > { %v3304_v16 = vpack.c.bf16 %v1276_v6, %v1200_v3 }
 0x3c6   : > { %v1245_v58 = vpop.permute.xlu1 %1244  ;;  %v1209_v0 = vpop.permute.xlu0 %1208 }
 0x3c7   : > { %v1212_v11 = vsel %vm4810_vm7, %v1207_v52, %v1209_v0 }
 0x3ca   : > { %v1221_v59 = vpop.permute.xlu0 %1220  ;;  %v1199_v61 = vpop.permute.xlu1 %1198 }
 0x3cb   : > { %v1201_v5 = vsel %vm4811_vm5, %v1197_v57, %v1199_v61  ;;  %v1224_v9 = vsel %vm4902_vm14, %v1219_v49, %v1221_v59  ;;  %vm4904_vm14 = vcmask 1039360  }
 0x3cc   : > { %v3310_v22 = vpack.c.bf16 %v1224_v9, %v1212_v11  ;;  %v1614_v11 = vld [vmem:[%s4792_s13] sm:$0xff] }
 0x3ce   : > { %v1233_v62 = vpop.permute.xlu0 %1232  ;;  %v1211_v1 = vpop.permute.xlu1 %1210 }
 0x3cf   : > { %v1213_v4 = vsel %vm4810_vm7, %v1209_v0, %v1211_v1  ;;  %vm4906_vm7 = vcmask 924672  }
 0x3d0   : > { %vm4907_vm5 = vmmov %vm4906_vm7 }
 0x3d2   : > { %v1275_v7 = vpop.permute.xlu0 %1274  ;;  %v1223_v8 = vpop.permute.xlu1 %1222 }
 0x3d3   : > { %v1277_v2 = vsel %vm808_vm10, %v1273_v56, %v1275_v7  ;;  %v1225_v10 = vsel %vm4903_vm1, %v1221_v59, %v1223_v8  ;;  %vm4905_vm1 = vmmov %vm4904_vm14 }
 0x3d4   : > { %v3301_v15 = vpack.c.bf16 %v1277_v2, %v1201_v5  ;;  %v3307_v17 = vpack.c.bf16 %v1225_v10, %v1213_v4  ;;  %v1622_v10 = vld [vmem:[%s4793_s14] sm:$0xff] }
 0x3d6   : > { %v1293_v13 = vpop.permute.xlu0 %1292  ;;  %v1257_v14 = vpop.permute.xlu1 %1256  ;;  %3302 = vmatprep.subr.msk.bf16.mxu1 %vm3678_vm2, %v3301_v15 }
 0x3d7   : > { %3305 = vmatpush1.bf16.msk.msra.mxu1 %vm3687_vm15, %v3304_v16 }
 0x3d8   : > { %3308 = vmatprep.subr.msk.bf16.mxu1 %vm3697_vm0, %v3307_v17 }
 0x3da   : > { %v1235_v18 = vpop.permute.xlu0 %1234  ;;  %v1247_v19 = vpop.permute.xlu1 %1246 }
 0x3db   : > { %v1238_v20 = vsel %vm4904_vm14, %v1233_v62, %v1235_v18  ;;  %v1239_v21 = vsel %vm4905_vm1, %v1235_v18, %v1237_v51  ;;  %3311 = vmatpush1.bf16.msk.msra.mxu1 %vm3709_vm3, %v3310_v22  ;;  %v1251_v23 = vsel %vm4906_vm7, %v1247_v19, %v1249_v55  ;;  %v1250_v24 = vsel %vm4907_vm5, %v1245_v58, %v1247_v19 }
 0x3dc   : > { %v3313_v29 = vpack.c.bf16 %v1239_v21, %v3766_v44  ;;  %v3316_v30 = vpack.c.bf16 %v1238_v20, %v3764_v40  ;;  %vm4908_vm5 = vcmask 908288   ;;  %vm4910_vm14 = vcmask 1043456  }
 0x3dd   : > { %vm4909_vm7 = vmmov %vm4908_vm5 }
 0x3de   : > { %v1295_v26 = vpop.permute.xlu0 %1294  ;;  %3314 = vmatprep.subr.msk.bf16.mxu1 %vm3722_vm11, %v3313_v29  ;;  %v1261_v12 = vpop.permute.xlu1 %1260  ;;  %vm4911_vm1 = vmmov %vm4910_vm14 }
 0x3df   : > { %v1298_v27 = vsel %vm844_vm13, %v1293_v13, %v1295_v26  ;;  %v1299_v28 = vsel %vm844_vm13, %v1295_v26, %v1297_v54  ;;  %3317 = vmatpush1.bf16.msk.msra.mxu1 %vm3732_vm12, %v3316_v30 }
 0x3e0   : > { %v3319_v32 = vpack.c.bf16 %v1299_v28, %v1251_v23  ;;  %v3322_v42 = vpack.c.bf16 %v1298_v27, %v1250_v24 }
 0x3e2   : > { %v1259_v31 = vpop.permute.xlu0 %1258  ;;  %3320 = vmatprep.subr.msk.bf16.mxu1 %vm3678_vm2, %v3319_v32 }
 0x3e3   : > { %v1262_v34 = vsel %vm4908_vm5, %v1257_v14, %v1259_v31  ;;  %v1263_v35 = vsel %vm4909_vm7, %v1259_v31, %v1261_v12  ;;  %3323 = vmatpush1.bf16.msk.msra.mxu1 %vm3687_vm15, %v3322_v42  ;;  %vm4912_vm5 = vcmask 588800   ;;  %vm4913_vm7 = vcmask 138240  }
 0x3e4   : > { %v1266_v36 = vsel %vm3547_vm8, %v1262_v34, 0.0  ;;  %v1267_v38 = vsel %vm3559_vm9, %v1263_v35, 0.0 }
 0x3e5   : > { %v1333_v43 = vpack.c.bf16 %v1267_v38, %v1267_v38  ;;  %v1332_v48 = vpack.c.bf16 %v1266_v36, %v1266_v36 }
 0x3e7   : > { %2807 = vmatprep.subr.msk.bf16.mxu1 %vm4910_vm14, %v1333_v43  ;;  %v1339_v49 = vsel %vm4911_vm1, %v1332_v48, 0  ;;  %vm4914_vm14 = vcmask 121856   ;;  %vm4915_vm1 = vcmask 7168  }
 0x3e8   : > { %1353 = vmatpush1.bf16.msra.mxu1 %v1339_v49 }
 0x3eb   : > { %2808 = vmatmul.mubr.msk.bf16.vlgmr.msra.gmra.mrb[8].mxu1 %vm4912_vm5, %v1334_v50  ;;  %vm4916_vm5 = vmmov %vm4913_vm7 }
 0x3ef   : > { %v1397_v56 = vpop.permute.xlu1 %1396 }
 0x3f3   : > { %v1389_v51 = vpop.permute.xlu0 %1388  ;;  %v1500_v13 = vpop.permute.xlu1 %1499 }
 0x3f7   : > { %v1424_v14 = vpop.permute.xlu0 %1423  ;;  %v1448_v15 = vpop.permute.xlu1 %1447 }
 0x3fb   : > { %v1436_v16 = vpop.permute.xlu0 %1435  ;;  %v1466_v17 = vpop.permute.xlu1 %1465 }
 0x3ff   : > { %v1478_v18 = vpop.permute.xlu0 %1477 }
 0x4be   : > { %v1378_v52 = vpop.f32.mrb[8].mxu1 }
 0x4bf   : > { %v1391_v54 = vmul.f32 %v1389_v51, %v1378_v52  ;;  %v1380_v55 = vpop.f32.mrb[9].mxu1 }
 0x4c0   : > { %v1392_v57 = vmul.f32 %v1389_v51, %v1380_v55  ;;  %v1382_v58 = vpop.f32.mrb[10].mxu1 }
 0x4c1   : > { %v1399_v0 = vadd.f32 %v1397_v56, %v1391_v54  ;;  %v1383_v59 = vpop.f32.mrb[11].mxu1 }
 0x4c2   : > { %v1400_v61 = vadd.f32 %v1397_v56, %v1392_v57 }
 0x4c3   : > { %v2809_v62 = vmul.f32 -1.442695, %v1399_v0 }
 0x4c4   : > { %v2810_v1 = vmul.f32 -1.442695, %v1400_v61 }
 0x4c5   : > { %3260 = vpow2.f32 %v2809_v62 }
 0x4c6   : > { %3262 = vpow2.f32 %v2810_v1 }
 0x4cf   : > { %v3261_v3 = vpop.eup %3260 }
 0x4d0   : > { %v3263_v5 = vpop.eup %3262  ;;  %v1407_v4 = vadd.f32 1.0, %v3261_v3 }
 0x4d1   : > { %v1408_v6 = vadd.f32 1.0, %v3263_v5 }
 0x4d2   : > { %3264 = vrcp.f32 %v1407_v4 }
 0x4d3   : > { %3266 = vrcp.f32 %v1408_v6 }
 0x4dc   : > { %v3265_v7 = vpop.eup %3264 }
 0x4dd   : > { %v3267_v8 = vpop.eup %3266  ;;  %v3868_v9 = vmul.f32 %v3265_v7, %v1399_v0 }
 0x4de   : > { %v3870_v2 = vmul.f32 %v3267_v8, %v1400_v61 }
 0x4df   : > { %1501 = vrot.lane.b32.xlu1 %v3868_v9, %s3360_s2  ;;  %1515 = vst [vmem:[#allocation3 + $0x40] sm:$0xff] %v3868_v9  ;;  %1425 = vrot.lane.b32.xlu0 %v3868_v9, %s3359_s22 }
 0x4e0   : > { %1516 = vst [vmem:[#allocation3 + $0x48] sm:$0xff] %v3870_v2 }
 0x4e3   : > { %1473 = vrot.lane.b32.xlu1 %v3868_v9, %s4814_s30  ;;  %1437 = vrot.lane.b32.xlu0 %v3868_v9, %s4818_s21 }
 0x4e7   : > { %1449 = vrot.lane.b32.xlu0 %v3868_v9, %s4816_s20  ;;  %1427 = vrot.lane.b32.xlu1 %v3870_v2, %s3359_s22 }
 0x4eb   : > { %1461 = vrot.lane.b32.xlu0 %v3868_v9, %s4888_s25  ;;  %1439 = vrot.lane.b32.xlu1 %v3870_v2, %s4818_s21 }
 0x4ef   : > { %1503 = vrot.lane.b32.xlu0 %v3870_v2, %s3360_s2  ;;  %1451 = vrot.lane.b32.xlu1 %v3870_v2, %s4816_s20 }
 0x4f3   : > { %1521 = vrot.lane.b32.xlu0 %v3868_v9, %s4889_s26  ;;  %1485 = vrot.lane.b32.xlu1 %v3868_v9, %s4812_s19 }
 0x4f7   : > { %1463 = vrot.lane.b32.xlu0 %v3870_v2, %s4888_s25  ;;  %1475 = vrot.lane.b32.xlu1 %v3870_v2, %s4814_s30 }
 0x4fb   : > { %1523 = vrot.lane.b32.xlu0 %v3870_v2, %s4889_s26  ;;  %1489 = vrot.lane.b32.xlu1 %v3598_v46, %s4812_s19  ;;  %v1526_v46 = vpop.permute.xlu1 %1525 }
 0x4ff   : > { %1487 = vrot.lane.b32.xlu0 %v3870_v2, %s4812_s19  ;;  %1625 = vperm.xlu1 %3242, %v1622_v10  }
 0x503   : > { %1617 = vperm.xlu0 %3241, %v1614_v11  }
 0x551   : > { %v1502_v19 = vpop.permute.xlu1 %1501  ;;  %v1426_v20 = vpop.permute.xlu0 %1425 }
 0x552   : > { %v1505_v21 = vsel %vm808_vm10, %v1500_v13, %v1502_v19  ;;  %v1429_v22 = vsel %vm4913_vm7, %v1424_v14, %v1426_v20  ;;  %vm4917_vm7 = vmmov %vm4914_vm14 }
 0x553   : > { %1509 = vst [vmem:[#allocation3 + $0x10] sm:$0xff] %v1505_v21  ;;  %v1433_v23 = vsel %vm3532_vm4, %v1429_v22, 0.0  ;;  %v3328_v56 = vpack.c.bf16 %v1505_v21, %v1429_v22 }
 0x554   : > { %1497 = vst [vmem:[#allocation3] sm:$0xff] %v1433_v23 }
 0x555   : > { %v1474_v24 = vpop.permute.xlu1 %1473  ;;  %v1438_v26 = vpop.permute.xlu0 %1437 }
 0x556   : > { %v1441_v27 = vsel %vm4914_vm14, %v1436_v16, %v1438_v26  ;;  %vm4918_vm14 = vmmov %vm4915_vm1  ;;  %v3367_v16 = vmov -inf  }
 0x557   : > { %v1445_v28 = vsel %vm3547_vm8, %v1441_v27, 0.0  ;;  %1648 = vst [vmem:[#allocation2] sm:$0xff] %v3367_v16  ;;  %1660 = vrot.lane.b32.xlu0 %v3367_v16, %s3359_s22  ;;  %1734 = vrot.lane.b32.xlu1 %v3367_v16, %s3360_s2 }
 0x558   : > { %1511 = vst [vmem:[#allocation3 + $0x20] sm:$0xff] %v1445_v28 }
 0x559   : > { %v1450_v29 = vpop.permute.xlu0 %1449  ;;  %v1428_v12 = vpop.permute.xlu1 %1427 }
 0x55a   : > { %v1453_v30 = vsel %vm4915_vm1, %v1448_v15, %v1450_v29  ;;  %v1430_v31 = vsel %vm4916_vm5, %v1426_v20, %v1428_v12  ;;  %vm4919_vm1 = vcmask 1039360   ;;  %v1563_v15 = vld [vmem:[%s4791_s12] sm:$0xf]  ;;  %v3995_v12 = vld [vmem:[%s4794_s15 + $0x88] sm:$0xff] }
 0x55b   : > { %v1457_v32 = vsel %vm3532_vm4, %v1453_v30, 0.0  ;;  %v1434_v34 = vsel %vm3540_vm6, %v1430_v31, 0.0  ;;  %vm4920_vm5 = vmmov %vm4919_vm1  ;;  %v3334_v3 = vpack.c.bf16 %v1453_v30, %v1441_v27  ;;  %1672 = vrot.lane.b32.xlu0 %v3367_v16, %s4818_s21  ;;  %1684 = vrot.lane.b32.xlu1 %v3367_v16, %s4816_s20 }
 0x55c   : > { %1513 = vst [vmem:[#allocation3 + $0x30] sm:$0xff] %v1457_v32  ;;  %1498 = vst [vmem:[#allocation3 + $0x8] sm:$0xff] %v1434_v34  ;;  %v4002_v32 = vld [vmem:[%s4794_s15] sm:$0xff]  ;;  %v4007_v34 = vld [vmem:[%s4794_s15 + $0x8] sm:$0xff] }
 0x55d   : > { %v1462_v35 = vpop.permute.xlu0 %1461  ;;  %v1440_v36 = vpop.permute.xlu1 %1439 }
 0x55e   : > { %v1442_v38 = vsel %vm4917_vm7, %v1438_v26, %v1440_v36  ;;  %vm4921_vm7 = vcmask 924672   ;;  %v1803_v36 = vand.u32 4294901760, %v4002_v32 }
 0x55f   : > { %v1446_v42 = vsel %vm3559_vm9, %v1442_v38, 0.0 }
 0x560   : > { %1512 = vst [vmem:[#allocation3 + $0x28] sm:$0xff] %v1446_v42 }
 0x561   : > { %v1504_v43 = vpop.permute.xlu0 %1503  ;;  %v1452_v48 = vpop.permute.xlu1 %1451 }
 0x562   : > { %v1506_v49 = vsel %vm808_vm10, %v1502_v19, %v1504_v43  ;;  %v1454_v50 = vsel %vm4918_vm14, %v1450_v29, %v1452_v48  ;;  %vm4922_vm14 = vmmov %vm4921_vm7  ;;  %v3990_v29 = vld [vmem:[%s4794_s15 + $0x80] sm:$0xff] }
 0x563   : > { %1510 = vst [vmem:[#allocation3 + $0x18] sm:$0xff] %v1506_v49  ;;  %v1458_v51 = vsel %vm3540_vm6, %v1454_v50, 0.0  ;;  %v3325_v55 = vpack.c.bf16 %v1506_v49, %v1430_v31  ;;  %v3331_v57 = vpack.c.bf16 %v1454_v50, %v1442_v38  ;;  %v1851_v30 = vand.u32 4294901760, %v3990_v29 }
 0x564   : > { %1514 = vst [vmem:[#allocation3 + $0x38] sm:$0xff] %v1458_v51  ;;  %v1854_v31 = vand.u32 4294901760, %v3995_v12  ;;  %v1806_v38 = vand.u32 4294901760, %v4007_v34  ;;  %v4024_v51 = vsub.f32 %v4002_v32, %v1803_v36 }
 0x565   : > { %v1522_v52 = vpop.permute.xlu0 %1521  ;;  %v1486_v54 = vpop.permute.xlu1 %1485  ;;  %3326 = vmatprep.subr.msk.bf16.mxu0 %vm3678_vm2, %v3325_v55  ;;  %v4014_v48 = vsub.f32 %v3990_v29, %v1851_v30  ;;  %v4039_v55 = vld [vmem:[%s4794_s15 + $0x98] sm:$0xff] }
 0x566   : > { %3329 = vmatpush1.bf16.msk.msra.mxu0 %vm3687_vm15, %v3328_v56  ;;  %v4019_v49 = vsub.f32 %v3995_v12, %v1854_v31  ;;  %v4219_v29 = vpack.c.bf16 %v1806_v38, %v1803_v36 }
 0x567   : > { %3332 = vmatprep.subr.msk.bf16.mxu0 %vm3697_vm0, %v3331_v57  ;;  %vm4923_vm0 = vcmask 908288   ;;  %4929 = vst [vmem:[#allocation4_spill] sm:$0xff] %v4014_v48  ;;  %v4841_v56 = vand.u32 4294901760, %v4014_v48 }
 0x568   : > { %4930 = vst [vmem:[#allocation5_spill] sm:$0xff] %v4019_v49  ;;  %v4832_v57 = vand.u32 4294901760, %v4019_v49 }
 0x569   : > { %v1464_v58 = vpop.permute.xlu0 %1463  ;;  %v1476_v0 = vpop.permute.xlu1 %1475 }
 0x56a   : > { %v1467_v59 = vsel %vm4919_vm1, %v1462_v35, %v1464_v58  ;;  %v1468_v61 = vsel %vm4920_vm5, %v1464_v58, %v1466_v17  ;;  %v1479_v62 = vsel %vm4921_vm7, %v1474_v24, %v1476_v0  ;;  %v1480_v1 = vsel %vm4922_vm14, %v1476_v0, %v1478_v18  ;;  %3335 = vmatpush1.bf16.msk.msra.mxu0 %vm3709_vm3, %v3334_v3  ;;  %vm4924_vm3 = vmmov %vm4923_vm0  ;;  %v4047_v0 = vld [vmem:[%s4794_s15 + $0x10] sm:$0xff] }
 0x56b   : > { %v3337_v6 = vpack.c.bf16 %v1468_v61, %v3870_v2  ;;  %v3340_v8 = vpack.c.bf16 %v1467_v59, %v3868_v9  ;;  %vm4928_vm1 = vcmask 146432   ;;  %v4052_v59 = vld [vmem:[%s4794_s15 + $0x18] sm:$0xff]  ;;  %v4831_v61 = vand.u32 4294901760, %v4024_v51 }
 0x56c   : > { %1651 = vst.msk [vmem:[#allocation2 + $0x18] sm:$0xff] %vm4928_vm1, %v3367_v16  ;;  %v2030_v3 = vsub.f32 %v4014_v48, %v4841_v56  ;;  %v4106_v16 = vld [vmem:[%s4794_s15 + $0x20] sm:$0xff]  ;;  %vm4952_vm5 = vcmask 121856   ;;  %vm4961_vm1 = vcmask 908288  }
 0x56d   : > { %v1524_v5 = vpop.permute.xlu0 %1523  ;;  %3338 = vmatprep.subr.msk.bf16.mxu0 %vm3722_vm11, %v3337_v6  ;;  %v1490_v7 = vpop.permute.xlu1 %1489  ;;  %vm4925_vm11 = vcmask 1043456   ;;  %v1918_v6 = vsub.f32 %v4024_v51, %v4831_v61  ;;  %vm4953_vm7 = vmmov %vm4952_vm5 }
 0x56e   : > { %v1527_v4 = vsel %vm844_vm13, %v1522_v52, %v1524_v5  ;;  %v1528_v45 = vsel %vm844_vm13, %v1524_v5, %v1526_v46  ;;  %3341 = vmatpush1.bf16.msk.msra.mxu0 %vm3732_vm12, %v3340_v8  ;;  %vm4926_vm12 = vmmov %vm4925_vm11  ;;  %v4029_v52 = vsub.f32 %v4007_v34, %v1806_v38  ;;  %v2037_v5 = vsub.f32 %v4019_v49, %v4832_v57  ;;  %v4240_v38 = vld [vmem:[%s4794_s15 + $0xc8] sm:$0xff] }
 0x56f   : > { %v3343_v11 = vpack.c.bf16 %v1528_v45, %v1480_v1  ;;  %v3346_v14 = vpack.c.bf16 %v1527_v4, %v1479_v62  ;;  %v1860_v1 = vand.u32 4294901760, %v4039_v55  ;;  %v1809_v45 = vand.u32 4294901760, %v4047_v0 }
 0x570   : > { %v4824_v62 = vand.u32 4294901760, %v4029_v52 }
 0x571   : > { %v1488_v10 = vpop.permute.xlu0 %1487  ;;  %3344 = vmatprep.subr.msk.bf16.mxu0 %vm3678_vm2, %v3343_v11  ;;  %vm4927_vm2 = vcmask 588800   ;;  %v4078_v8 = vsub.f32 %v4039_v55, %v1860_v1  ;;  %v4084_v11 = vld [vmem:[%s4794_s15 + $0xa0] sm:$0xff] }
 0x572   : > { %v1491_v53 = vsel %vm4923_vm0, %v1486_v54, %v1488_v10  ;;  %v1492_v13 = vsel %vm4924_vm3, %v1488_v10, %v1490_v7  ;;  %3347 = vmatpush1.bf16.msk.msra.mxu0 %vm3687_vm15, %v3346_v14  ;;  %v4034_v54 = vld [vmem:[%s4794_s15 + $0x90] sm:$0xff]  ;;  %v1925_v7 = vsub.f32 %v4029_v52, %v4824_v62  ;;  %v1812_v10 = vand.u32 4294901760, %v4052_v59  ;;  %v4095_v14 = vld [vmem:[%s4794_s15 + $0xa8] sm:$0xff] }
 0x573   : > { %v1495_v2 = vsel %vm3547_vm8, %v1491_v53, 0.0  ;;  %v1496_v60 = vsel %vm3559_vm9, %v1492_v13, 0.0  ;;  %v3975_v41 = vld [vmem:[#allocation2 + $0x18] sm:$0xff]  ;;  %v1857_v58 = vand.u32 4294901760, %v4034_v54  ;;  %v2031_v53 = vand.u32 4294901760, %v2030_v3 }
 0x574   : > { %v1562_v63 = vpack.c.bf16 %v1496_v60, %v1496_v60  ;;  %v1561_v9 = vpack.c.bf16 %v1495_v2, %v1495_v2  ;;  %1714 = vrot.lane.b32.xlu0 %v3975_v41, %s4814_s30  ;;  %1702 = vrot.lane.b32.xlu1 %v3975_v41, %s4888_s25  ;;  %v2038_v13 = vand.u32 4294901760, %v2037_v5  ;;  %v4090_v60 = vsub.f32 %v4047_v0, %v1809_v45  ;;  %s4937_s30 = smov 113  }
 0x575   : > { %v4066_v4 = vsub.f32 %v4034_v54, %v1857_v58  ;;  %v4268_v54 = vld [vmem:[%s4794_s15 + $0x40] sm:$0xff]  ;;  %vm4951_vm15 = vcmask 138240   ;;  %vm4955_vm0 = vcmask 7168  }
 0x576   : > { %2811 = vmatprep.subr.msk.bf16.mxu0 %vm4925_vm11, %v1562_v63  ;;  %v1568_v39 = vsel %vm4926_vm12, %v1561_v9, 0  ;;  %v1919_v63 = vand.u32 4294901760, %v1918_v6  ;;  %v1926_v9 = vand.u32 4294901760, %v1925_v7  ;;  %vm4954_vm14 = vmmov %vm4951_vm15  ;;  %vm4959_vm12 = vcmask 924672  }
 0x577   : > { %1582 = vmatpush1.bf16.msra.mxu0 %v1568_v39  ;;  %v4823_v2 = vand.u32 4294901760, %v4066_v4  ;;  %v4822_v39 = vand.u32 4294901760, %v4078_v8  ;;  %vm4956_vm3 = vmmov %vm4955_vm0 }
 0x57a   : > { %2812 = vmatmul.mubr.msk.bf16.vlgmr.msra.gmra.mrb[4].mxu0 %vm4927_vm2, %v1563_v15  ;;  %v4101_v15 = vsub.f32 %v4052_v59, %v1812_v10  ;;  %v4298_v59 = vld [vmem:[%s4794_s15 + $0x48] sm:$0xff]  ;;  %vm4960_vm2 = vmmov %vm4959_vm12 }
 0x57e   : > { %v1626_v20 = vpop.permute.xlu1 %1625 }
 0x582   : > { %v1618_v17 = vpop.permute.xlu0 %1617 }
 0x64d   : > { %v1607_v18 = vpop.f32.mrb[4].mxu0 }
 0x64e   : > { %v1620_v46 = vmul.f32 %v1618_v17, %v1607_v18  ;;  %v1609_v19 = vpop.f32.mrb[5].mxu0  ;;  %v2044_v18 = vsub.f32 %v4066_v4, %v4823_v2 }
 0x64f   : > { %v1621_v21 = vmul.f32 %v1618_v17, %v1609_v19  ;;  %v1611_v22 = vpop.f32.mrb[6].mxu0  ;;  %v3062_v17 = vpack.c.bf16 %v2038_v13, %v2031_v53  ;;  %v1863_v19 = vand.u32 4294901760, %v4084_v11 }
 0x650   : > { %v3981_v23 = vadd.f32 %v1626_v20, %v1620_v46  ;;  %v1612_v24 = vpop.f32.mrb[7].mxu0  ;;  %v4821_v46 = vand.u32 4294901760, %v4090_v60  ;;  %v2051_v22 = vsub.f32 %v4078_v8, %v4822_v39 }
 0x651   : > { %v3983_v26 = vadd.f32 %v1626_v20, %v1621_v21  ;;  %v4116_v20 = vld [vmem:[%s4794_s15 + $0x28] sm:$0xff]  ;;  %v3064_v21 = vpack.c.bf16 %v1926_v9, %v1919_v63  ;;  %v4820_v24 = vand.u32 4294901760, %v4101_v15  ;;  %3063 = vmatprep.subr.bf16.mxu0 %v3062_v17  ;;  %v4155_v17 = vld [vmem:[%s4794_s15 + $0xb8] sm:$0xff] }
 0x652   : > { %v2813_v27 = vmul.f32 -1.442695, %v3981_v23  ;;  %v2052_v3 = vand.u32 4294901760, %v2051_v22  ;;  %v1818_v7 = vand.u32 4294901760, %v4116_v20 }
 0x653   : > { %v2814_v28 = vmul.f32 -1.442695, %v3983_v26  ;;  %3065 = vmatpush3.bf16.msra.mxu0 %v3064_v21  ;;  %v1939_v5 = vsub.f32 %v4101_v15, %v4820_v24 }
 0x654   : > { %3268 = vpow2.f32 %v2813_v27  ;;  %v1866_v27 = vand.u32 4294901760, %v4095_v14 }
 0x655   : > { %3270 = vpow2.f32 %v2814_v28  ;;  %v4126_v28 = vld [vmem:[%s4794_s15 + $0xb0] sm:$0xff] }
 0x656   : > { %v4143_v6 = vsub.f32 %v4095_v14, %v1866_v27  ;;  %v1830_v14 = vand.u32 4294901760, %v4298_v59 }
 0x65e   : > { %v3269_v35 = vpop.eup %3268 }
 0x65f   : > { %v3271_v42 = vpop.eup %3270  ;;  %v1636_v43 = vadd.f32 1.0, %v3269_v35  ;;  %v2045_v35 = vand.u32 4294901760, %v2044_v18  ;;  %v1869_v18 = vand.u32 4294901760, %v4126_v28 }
 0x660   : > { %v1637_v50 = vadd.f32 1.0, %v3271_v42  ;;  %v1932_v42 = vsub.f32 %v4090_v60, %v4821_v46  ;;  %v1940_v46 = vand.u32 4294901760, %v1939_v5  ;;  %v1872_v5 = vand.u32 4294901760, %v4155_v17 }
 0x661   : > { %3272 = vrcp.f32 %v1636_v43  ;;  %v4134_v43 = vsub.f32 %v4084_v11, %v1863_v19  ;;  %v3066_v24 = vpack.c.bf16 %v2052_v3, %v2045_v35 }
 0x662   : > { %3274 = vrcp.f32 %v1637_v50  ;;  %v1815_v50 = vand.u32 4294901760, %v4106_v16  ;;  %v1933_v13 = vand.u32 4294901760, %v1932_v42  ;;  %v4827_v42 = vand.u32 4294901760, %v4143_v6 }
 0x663   : > { %v4828_v63 = vand.u32 4294901760, %v4134_v43  ;;  %3067 = vmatprep.subr.bf16.mxu0 %v3066_v24  ;;  %v4233_v32 = vsub.f32 %v4155_v17, %v1872_v5 }
 0x664   : > { %v4150_v9 = vsub.f32 %v4106_v16, %v1815_v50  ;;  %v3068_v3 = vpack.c.bf16 %v1940_v46, %v1933_v13  ;;  %v4199_v46 = vpack.c.bf16 %v1854_v31, %v1851_v30  ;;  %v4225_v30 = vsub.f32 %v4126_v28, %v1869_v18 }
 0x665   : > { %v2058_v2 = vsub.f32 %v4134_v43, %v4828_v63  ;;  %v4334_v11 = vpack.c.bf16 %v1818_v7, %v1815_v50 }
 0x666   : > { %v4825_v62 = vand.u32 4294901760, %v4150_v9  ;;  %3069 = vmatpush3.bf16.msra.mxu0 %v3068_v3  ;;  %3031 = vmatprep.subr.bf16.mxu1 %v4199_v46  ;;  %v4830_v3 = vand.u32 4294901760, %v4225_v30 }
 0x667   : > { %v2059_v24 = vand.u32 4294901760, %v2058_v2  ;;  %3033 = vmatpush3.bf16.msra.mxu1 %v4219_v29  ;;  %4935 = vst [vmem:[#allocation8_spill] sm:$0xff] %v4334_v11 }
 0x668   : > { %v1946_v13 = vsub.f32 %v4150_v9, %v4825_v62  ;;  %v4829_v62 = vand.u32 4294901760, %v4233_v32 }
 0x66a   : > { %v1947_v31 = vand.u32 4294901760, %v1946_v13  ;;  %v4252_v13 = vpack.c.bf16 %v1860_v1, %v1857_v58  ;;  %v2072_v58 = vsub.f32 %v4225_v30, %v4830_v3  ;;  %v4281_v1 = vpack.c.bf16 %v1812_v10, %v1809_v45 }
 0x66b   : > { %v3273_v53 = vpop.eup %3272 }
 0x66c   : > { %v3275_v21 = vpop.eup %3274  ;;  %v1642_v22 = vmul.f32 %v3273_v53, %v3981_v23  ;;  %v4173_v23 = vsub.f32 %v4116_v20, %v1818_v7  ;;  %v4185_v53 = vld [vmem:[%s4794_s15 + $0x30] sm:$0xff]  ;;  %4932 = vst [vmem:[#allocation6_spill] sm:$0xff] %v4281_v1  ;;  %3035 = vmatprep.subr.bf16.mxu1 %v4252_v13  ;;  %v2073_v10 = vand.u32 4294901760, %v2072_v58 }
 0x66d   : > { %v1643_v39 = vmul.f32 %v3275_v21, %v3983_v26  ;;  %v2065_v26 = vsub.f32 %v4143_v6, %v4827_v42  ;;  %v4190_v21 = vld [vmem:[%s4794_s15 + $0x38] sm:$0xff]  ;;  %v1821_v34 = vand.u32 4294901760, %v4185_v53  ;;  %v2079_v42 = vsub.f32 %v4233_v32, %v4829_v62  ;;  %3037 = vmatpush3.bf16.msra.mxu1 %v4281_v1  ;;  %v4362_v7 = vld [vmem:[%s4794_s15 + $0x50] sm:$0xff] }
 0x66e   : > { %v4176_v35 = vadd.f32 %v1642_v22, %v3764_v40  ;;  %v4207_v22 = vld [vmem:[%s4794_s15 + $0xc0] sm:$0xff]  ;;  %v4826_v12 = vand.u32 4294901760, %v4173_v23  ;;  %v1824_v36 = vand.u32 4294901760, %v4190_v21  ;;  %v1827_v62 = vand.u32 4294901760, %v4268_v54 }
 0x66f   : > { %v4193_v40 = vadd.f32 %v1643_v39, %v3766_v44  ;;  %v2066_v44 = vand.u32 4294901760, %v2065_v26  ;;  %v1875_v26 = vand.u32 4294901760, %v4207_v22  ;;  %v2080_v3 = vand.u32 4294901760, %v2079_v42 }
 0x670   : > { %1646 = vst [vmem:[%s594_s24] sm:$0xff] %v4176_v35  ;;  %1652 = vst [vmem:[#allocation2 + $0x8] sm:$0xff] %v4176_v35  ;;  %1736 = vrot.lane.b32.xlu1 %v4176_v35, %s3360_s2  ;;  %1662 = vrot.lane.b32.xlu0 %v4176_v35, %s3359_s22  ;;  %v1953_v39 = vsub.f32 %v4173_v23, %v4826_v12  ;;  %v1878_v12 = vand.u32 4294901760, %v4240_v38  ;;  %v4346_v16 = vsub.f32 %v4268_v54, %v1827_v62 }
 0x671   : > { %1647 = vst [vmem:[%s594_s24 + $0x8] sm:$0xff] %v4193_v40  ;;  %1653 = vst [vmem:[#allocation2 + $0x10] sm:$0xff] %v4193_v40  ;;  %v3070_v2 = vpack.c.bf16 %v2066_v44, %v2059_v24  ;;  %v4258_v24 = vsub.f32 %v4185_v53, %v1821_v34  ;;  %v4263_v44 = vsub.f32 %v4190_v21, %v1824_v36  ;;  %v4412_v21 = vld [vmem:[%s4794_s15 + $0xe8] sm:$0xff] }
 0x672   : > { %v1954_v55 = vand.u32 4294901760, %v1953_v39  ;;  %v4293_v0 = vsub.f32 %v4207_v22, %v1875_v26 }
 0x673   : > { %3071 = vmatprep.subr.bf16.mxu0 %v3070_v2  ;;  %v4834_v39 = vand.u32 4294901760, %v4258_v24  ;;  %v4833_v63 = vand.u32 4294901760, %v4263_v44  ;;  %v4304_v2 = vsub.f32 %v4240_v38, %v1878_v12 }
 0x674   : > { %1674 = vrot.lane.b32.xlu1 %v4176_v35, %s4931_s29  ;;  %1698 = vrot.lane.b32.xlu0 %v4176_v35, %s4888_s25  ;;  %v3072_v45 = vpack.c.bf16 %v1954_v55, %v1947_v31  ;;  %v4317_v31 = vpack.c.bf16 %v1866_v27, %v1863_v19  ;;  %v4322_v55 = vld [vmem:[%s4794_s15 + $0xd0] sm:$0xff]  ;;  %v4839_v42 = vand.u32 4294901760, %v4293_v0  ;;  %v4340_v19 = vld [vmem:[%s4794_s15 + $0xd8] sm:$0xff]  ;;  %v3074_v27 = vpack.c.bf16 %v2080_v3, %v2073_v10 }
 0x675   : > { %v1960_v61 = vsub.f32 %v4258_v24, %v4834_v39  ;;  %v1967_v57 = vsub.f32 %v4263_v44, %v4833_v63  ;;  %v4835_v58 = vand.u32 4294901760, %v4304_v2  ;;  %v4369_v10 = vpack.c.bf16 %v1872_v5, %v1869_v18 }
 0x676   : > { %4933 = vst [vmem:[#allocation7_spill] sm:$0xff] %v4317_v31  ;;  %3073 = vmatpush3.bf16.msra.mxu0 %v3072_v45  ;;  %3039 = vmatprep.subr.bf16.mxu1 %v4317_v31  ;;  %v2086_v20 = vsub.f32 %v4293_v0, %v4839_v42  ;;  %v4838_v45 = vand.u32 4294901760, %v4346_v16 }
 0x677   : > { %v1961_v63 = vand.u32 4294901760, %v1960_v61  ;;  %v1968_v39 = vand.u32 4294901760, %v1967_v57  ;;  %v2093_v50 = vsub.f32 %v4304_v2, %v4835_v58  ;;  %3041 = vmatpush3.bf16.msra.mxu1 %v4334_v11  ;;  %v4356_v61 = vsub.f32 %v4298_v59, %v1830_v14  ;;  %3075 = vmatprep.subr.bf16.mxu0 %v3074_v27  ;;  %4936 = vst [vmem:[#allocation9_spill] sm:$0xff] %v4369_v10  ;;  %v4375_v58 = vld [vmem:[%s4794_s15 + $0x58] sm:$0xff] }
 0x678   : > { %1686 = vrot.lane.b32.xlu1 %v4176_v35, %s4934_s23  ;;  %1738 = vrot.lane.b32.xlu0 %v4193_v40, %s3360_s2  ;;  %v1881_v57 = vand.u32 4294901760, %v4322_v55  ;;  %v1884_v59 = vand.u32 4294901760, %v4340_v19  ;;  %v1974_v18 = vsub.f32 %v4346_v16, %v4838_v45  ;;  %v4396_v27 = vpack.c.bf16 %v1824_v36, %v1821_v34 }
 0x679   : > { %v3076_v3 = vpack.c.bf16 %v1968_v39, %v1961_v63  ;;  %v2087_v63 = vand.u32 4294901760, %v2086_v20  ;;  %v2094_v39 = vand.u32 4294901760, %v2093_v50  ;;  %v4836_v28 = vand.u32 4294901760, %v4356_v61  ;;  %3043 = vmatprep.subr.bf16.mxu1 %v4369_v10 }
 0x67a   : > { %v4383_v17 = vsub.f32 %v4322_v55, %v1881_v57  ;;  %v4390_v5 = vsub.f32 %v4340_v19, %v1884_v59  ;;  %4938 = vst [vmem:[#allocation10_spill] sm:$0xff] %v4396_v27  ;;  %v1833_v20 = vand.u32 4294901760, %v4362_v7  ;;  %v4402_v55 = vld [vmem:[%s4794_s15 + $0xe0] sm:$0xff]  ;;  %v1836_v53 = vand.u32 4294901760, %v4375_v58 }
 0x67b   : > { %3077 = vmatpush3.bf16.msra.mxu0 %v3076_v3  ;;  %v3078_v50 = vpack.c.bf16 %v2094_v39, %v2087_v63  ;;  %v1981_v3 = vsub.f32 %v4356_v61, %v4836_v28  ;;  %v1975_v34 = vand.u32 4294901760, %v1974_v18  ;;  %3045 = vmatpush3.bf16.msra.mxu1 %v4396_v27  ;;  %v4423_v39 = vpack.c.bf16 %v1878_v12, %v1875_v26  ;;  %v4439_v12 = vld [vmem:[%s4794_s15 + $0x60] sm:$0xff] }
 0x67c   : > { %1710 = vrot.lane.b32.xlu1 %v4176_v35, %s4937_s30  ;;  %1676 = vrot.lane.b32.xlu0 %v4193_v40, %s4931_s29  ;;  %v4837_v19 = vand.u32 4294901760, %v4383_v17  ;;  %v4840_v36 = vand.u32 4294901760, %v4390_v5  ;;  %v4417_v63 = vsub.f32 %v4362_v7, %v1833_v20  ;;  %v4433_v7 = vsub.f32 %v4375_v58, %v1836_v53 }
 0x67d   : > { %4939 = vst [vmem:[#allocation11_spill] sm:$0xff] %v4423_v39  ;;  %v1982_v18 = vand.u32 4294901760, %v1981_v3  ;;  %v1887_v22 = vand.u32 4294901760, %v4402_v55  ;;  %3079 = vmatprep.subr.bf16.mxu0 %v3078_v50  ;;  %3047 = vmatprep.subr.bf16.mxu1 %v4423_v39  ;;  %v1890_v3 = vand.u32 4294901760, %v4412_v21  ;;  %v4449_v58 = vpack.c.bf16 %v1830_v14, %v1827_v62  ;;  %v1800_v14 = vld [vmem:[%s4794_s15 + $0xf0] sm:$0xff] }
 0x67e   : > { %v2100_v28 = vsub.f32 %v4383_v17, %v4837_v19  ;;  %v2107_v38 = vsub.f32 %v4390_v5, %v4840_v36  ;;  %v4844_v26 = vand.u32 4294901760, %v4417_v63  ;;  %v1783_v19 = vld [vmem:[%s4794_s15 + $0x68] sm:$0xff]  ;;  %v4851_v42 = vand.u32 4294901760, %v4433_v7 }
 0x67f   : > { %4940 = vst [vmem:[#allocation12_spill] sm:$0xff] %v4449_v58  ;;  %v3080_v45 = vpack.c.bf16 %v1982_v18, %v1975_v34  ;;  %v4456_v36 = vsub.f32 %v4402_v55, %v1887_v22  ;;  %v4462_v54 = vsub.f32 %v4412_v21, %v1890_v3  ;;  %3049 = vmatpush3.bf16.msra.mxu1 %v4449_v58  ;;  %v1839_v62 = vand.u32 4294901760, %v4439_v12  ;;  %v1801_v18 = vld [vmem:[%s4794_s15 + $0xf8] sm:$0xff] }
 0x680   : > { %1688 = vrot.lane.b32.xlu0 %v4193_v40, %s4934_s23  ;;  %1664 = vrot.lane.b32.xlu1 %v4193_v40, %s3359_s22  ;;  %v2101_v50 = vand.u32 4294901760, %v2100_v28  ;;  %v2108_v56 = vand.u32 4294901760, %v2107_v38  ;;  %v1988_v39 = vsub.f32 %v4417_v63, %v4844_v26  ;;  %v1995_v28 = vsub.f32 %v4433_v7, %v4851_v42 }
 0x681   : > { %v4855_v55 = vand.u32 4294901760, %v4456_v36  ;;  %v1842_v21 = vand.u32 4294901760, %v1783_v19  ;;  %v4477_v34 = vpack.c.bf16 %v1884_v59, %v1881_v57  ;;  %3081 = vmatpush3.bf16.msra.mxu0 %v3080_v45  ;;  %v4854_v58 = vand.u32 4294901760, %v4462_v54 }
 0x682   : > { %v3082_v38 = vpack.c.bf16 %v2108_v56, %v2101_v50  ;;  %v1989_v26 = vand.u32 4294901760, %v1988_v39  ;;  %v4484_v27 = vsub.f32 %v4439_v12, %v1839_v62  ;;  %v1996_v10 = vand.u32 4294901760, %v1995_v28  ;;  %v1784_v56 = vld [vmem:[%s4794_s15 + $0x70] sm:$0xff] }
 0x683   : > { %4941 = vst [vmem:[#allocation13_spill] sm:$0xff] %v4477_v34  ;;  %v2114_v42 = vsub.f32 %v4456_v36, %v4855_v55  ;;  %v4489_v11 = vsub.f32 %v1783_v19, %v1842_v21  ;;  %3051 = vmatprep.subr.bf16.mxu1 %v4477_v34  ;;  %v1893_v57 = vand.u32 4294901760, %v1800_v14  ;;  %v2121_v45 = vsub.f32 %v4462_v54, %v4854_v58  ;;  %v1785_v19 = vld [vmem:[%s4794_s15 + $0x78] sm:$0xff] }
 0x684   : > { %1700 = vrot.lane.b32.xlu0 %v4193_v40, %s4888_s25  ;;  %1760 = vrot.lane.b32.xlu1 %v3975_v41, %s4889_s26  ;;  %4942 = vst [vmem:[#allocation14_spill] sm:$0xff] %v4484_v27  ;;  %v4862_v59 = vand.u32 4294901760, %v4484_v27  ;;  %v1896_v39 = vand.u32 4294901760, %v1801_v18  ;;  %v4499_v12 = vpack.c.bf16 %v1836_v53, %v1833_v20  ;;  %v3084_v50 = vpack.c.bf16 %v1996_v10, %v1989_v26 }
 0x685   : > { %3083 = vmatprep.subr.bf16.mxu0 %v3082_v38  ;;  %v2115_v28 = vand.u32 4294901760, %v2114_v42  ;;  %v4863_v38 = vand.u32 4294901760, %v4489_v11  ;;  %v4509_v58 = vsub.f32 %v1800_v14, %v1893_v57  ;;  %v2122_v55 = vand.u32 4294901760, %v2121_v45 }
 0x686   : > { %4943 = vst [vmem:[#allocation15_spill] sm:$0xff] %v4499_v12  ;;  %v2002_v20 = vsub.f32 %v4484_v27, %v4862_v59  ;;  %v4514_v53 = vsub.f32 %v1801_v18, %v1896_v39  ;;  %3053 = vmatpush3.bf16.msra.mxu1 %v4499_v12  ;;  %v1845_v34 = vand.u32 4294901760, %v1784_v56  ;;  %3085 = vmatpush3.bf16.msra.mxu0 %v3084_v50  ;;  %v1848_v26 = vand.u32 4294901760, %v1785_v19 }
 0x687   : > { %4944 = vst [vmem:[#allocation16_spill] sm:$0xff] %v4509_v58  ;;  %v2009_v10 = vsub.f32 %v4489_v11, %v4863_v38  ;;  %v2127_v42 = vand.u32 4294901760, %v4509_v58  ;;  %v4521_v14 = vpack.c.bf16 %v1890_v3, %v1887_v22  ;;  %v3086_v45 = vpack.c.bf16 %v2122_v55, %v2115_v28 }
 0x688   : > { %1758 = vrot.lane.b32.xlu0 %v4193_v40, %s4889_s26  ;;  %1712 = vrot.lane.b32.xlu1 %v4193_v40, %s4937_s30  ;;  %4945 = vst [vmem:[#allocation17_spill] sm:$0xff] %v4514_v53  ;;  %v2003_v31 = vand.u32 4294901760, %v2002_v20  ;;  %v2134_v1 = vand.u32 4294901760, %v4514_v53  ;;  %v4524_v59 = vsub.f32 %v1784_v56, %v1845_v34  ;;  %s4947_s30 = smov 111   ;;  %v4531_v38 = vsub.f32 %v1785_v19, %v1848_v26 }
 0x689   : > { %v2010_v18 = vand.u32 4294901760, %v2009_v10  ;;  %v2128_v50 = vsub.f32 %v4509_v58, %v2127_v42  ;;  %v4533_v12 = vpack.c.bf16 %v1842_v21, %v1839_v62  ;;  %3087 = vmatprep.subr.bf16.mxu0 %v3086_v45  ;;  %3055 = vmatprep.subr.bf16.mxu1 %v4521_v14  ;;  %v4538_v55 = vpack.c.bf16 %v1896_v39, %v1893_v57 }
 0x68a   : > { %4946 = vst [vmem:[#allocation18_spill] sm:$0xff] %v4524_v59  ;;  %4948 = vst [vmem:[#allocation19_spill] sm:$0xff] %v4531_v38  ;;  %v2135_v22 = vsub.f32 %v4514_v53, %v2134_v1  ;;  %v2015_v3 = vand.u32 4294901760, %v4524_v59  ;;  %v4542_v20 = vpack.c.bf16 %v1848_v26, %v1845_v34  ;;  %v3094_v21 = vpack.c.bf16 %v4019_v49, %v4014_v48 }
 0x68b   : > { %v3088_v56 = vpack.c.bf16 %v2010_v18, %v2003_v31  ;;  %v2129_v28 = vand.u32 4294901760, %v2128_v50  ;;  %3057 = vmatpush3.bf16.msra.mxu1 %v4533_v12 }
 0x68c   : > { %1724 = vrot.lane.b32.xlu0 %v4193_v40, %s4947_s30  ;;  %1726 = vrot.lane.b32.xlu1 %v3975_v41, %s4947_s30  ;;  %v2022_v41 = vand.u32 4294901760, %v4531_v38  ;;  %v2136_v19 = vand.u32 4294901760, %v2135_v22  ;;  %v2016_v62 = vsub.f32 %v4524_v59, %v2015_v3 }
 0x68d   : > { %3059 = vmatprep.subr.bf16.mxu1 %v4538_v55  ;;  %3089 = vmatpush3.bf16.msra.mxu0 %v3088_v56 }
 0x68e   : > { %v2023_v31 = vsub.f32 %v4531_v38, %v2022_v41  ;;  %v3090_v57 = vpack.c.bf16 %v2136_v19, %v2129_v28  ;;  %v2017_v34 = vand.u32 4294901760, %v2016_v62  ;;  %v4585_v19 = vpack.c.bf16 %v2134_v1, %v2127_v42  ;;  %v1735_v28 = vpop.permute.xlu1 %1734 }
 0x68f   : > { %3061 = vmatpush3.bf16.msra.mxu1 %v4542_v20  ;;  %v4587_v62 = vpack.c.bf16 %v2022_v41, %v2015_v3 }
 0x690   : > { %1756 = vrot.lane.b32.xlu0 %v4176_v35, %s4889_s26  ;;  %1722 = vrot.lane.b32.xlu1 %v4176_v35, %s4947_s30  ;;  %v2024_v10 = vand.u32 4294901760, %v2023_v31  ;;  %4949 = vst [vmem:[#allocation20_spill] sm:$0xff] %v4585_v19  ;;  %s5024_s26 = sshll.u32 %s5026_s28, 3 }
 0x691   : > { %3091 = vmatprep.subr.bf16.mxu0 %v3090_v57  ;;  %3095 = vmatprep.subr.bf16.mxu1 %v3094_v21  ;;  %4950 = vst [vmem:[#allocation21_spill] sm:$0xff] %v4587_v62  ;;  %v1661_v21 = vpop.permute.xlu0 %1660  ;;  %s598_s23 = scalar_lea.vmem %s4797_s18, %s5024_s26 }
 0x692   : > { %v3092_v26 = vpack.c.bf16 %v2024_v10, %v2017_v34  ;;  %v1685_v31 = vpop.permute.xlu1 %1684 }
 0x694   : > { %3093 = vmatpush3.bf16.msra.mxu0 %v3092_v26 }
 0x695   : > { %3127 = vmatprep.subr.bf16.mxu0 %v4199_v46  ;;  %v1673_v56 = vpop.permute.xlu0 %1672 }
 0x696   : > { %v1703_v50 = vpop.permute.xlu1 %1702 }
 0x699   : > { %v1715_v22 = vpop.permute.xlu0 %1714 }
 0x6e2   : > { %v1737_v57 = vpop.permute.xlu1 %1736  ;;  %v1663_v18 = vpop.permute.xlu0 %1662 }
 0x6e3   : > { %v1666_v26 = vsel %vm4951_vm15, %v1661_v21, %v1663_v18  ;;  %v1740_v41 = vsel %vm808_vm10, %v1735_v28, %v1737_v57 }
 0x6e4   : > { %v1670_v62 = vsel %vm3532_vm4, %v1666_v26, -inf }
 0x6e5   : > { %v1744_v27 = vmax.f32 %v1670_v62, %v1740_v41 }
 0x6e6   : > { %v1675_v45 = vpop.permute.xlu1 %1674  ;;  %v1699_v34 = vpop.permute.xlu0 %1698 }
 0x6e7   : > { %v1678_v1 = vsel %vm4952_vm5, %v1673_v56, %v1675_v45 }
 0x6e8   : > { %v1682_v56 = vsel %vm3547_vm8, %v1678_v1, -inf }
 0x6ea   : > { %v1687_v39 = vpop.permute.xlu1 %1686  ;;  %v1739_v49 = vpop.permute.xlu0 %1738 }
 0x6eb   : > { %v1690_v38 = vsel %vm4955_vm0, %v1685_v31, %v1687_v39  ;;  %v1741_v58 = vsel %vm808_vm10, %v1737_v57, %v1739_v49  ;;  %v1746_v49 = vmax.f32 %v1744_v27, %v1682_v56  ;;  %vm4957_vm10 = vcmask 1039360  }
 0x6ec   : > { %vm4958_vm11 = vmmov %vm4957_vm10 }
 0x6ee   : > { %v1711_v10 = vpop.permute.xlu1 %1710  ;;  %v1677_v48 = vpop.permute.xlu0 %1676 }
 0x6ef   : > { %v1679_v19 = vsel %vm4953_vm7, %v1675_v45, %v1677_v48 }
 0x6f0   : > { %v1683_v26 = vsel %vm3559_vm9, %v1679_v19, -inf }
 0x6f2   : > { %v1689_v42 = vpop.permute.xlu0 %1688  ;;  %v1665_v3 = vpop.permute.xlu1 %1664 }
 0x6f3   : > { %v1667_v59 = vsel %vm4954_vm14, %v1663_v18, %v1665_v3  ;;  %v1691_v53 = vsel %vm4956_vm3, %v1687_v39, %v1689_v42  ;;  %v1694_v18 = vsel %vm3532_vm4, %v1690_v38, -inf }
 0x6f4   : > { %v1671_v21 = vsel %vm3540_vm6, %v1667_v59, -inf  ;;  %v1695_v59 = vsel %vm3540_vm6, %v1691_v53, -inf  ;;  %v1748_v3 = vmax.f32 %v1746_v49, %v1694_v18 }
 0x6f5   : > { %v1745_v28 = vmax.f32 %v1671_v21, %v1741_v58 }
 0x6f6   : > { %v1701_v48 = vpop.permute.xlu0 %1700  ;;  %v1761_v45 = vpop.permute.xlu1 %1760 }
 0x6f7   : > { %v1747_v31 = vmax.f32 %v1745_v28, %v1683_v26  ;;  %v1705_v57 = vsel %vm4957_vm10, %v1701_v48, %v1703_v50  ;;  %v1704_v58 = vsel %vm4958_vm11, %v1699_v34, %v1701_v48  ;;  %v1750_v50 = vmax.f32 %v1748_v3, %v4176_v35 }
 0x6f8   : > { %v1709_v38 = vsel %vm3559_vm9, %v1705_v57, -inf  ;;  %v1708_v53 = vsel %vm3547_vm8, %v1704_v58, -inf }
 0x6f9   : > { %v1749_v1 = vmax.f32 %v1747_v31, %v1695_v59  ;;  %v1752_v26 = vmax.f32 %v1750_v50, %v1708_v53  ;;  %v4964_v53 = vld [vmem:[#allocation7_spill] sm:$0xff]  ;;  %v4965_v50 = vpack.c.bf16 %v4029_v52, %v4024_v51 }
 0x6fa   : > { %v1759_v39 = vpop.permute.xlu0 %1758  ;;  %v1713_v62 = vpop.permute.xlu1 %1712 }
 0x6fb   : > { %v1751_v19 = vmax.f32 %v1749_v1, %v4193_v40  ;;  %v1717_v42 = vsel %vm4959_vm12, %v1713_v62, %v1715_v22  ;;  %v1716_v27 = vsel %vm4960_vm2, %v1711_v10, %v1713_v62  ;;  %v1763_v10 = vsel %vm844_vm13, %v1759_v39, %v1761_v45 }
 0x6fc   : > { %v1721_v34 = vsel %vm3540_vm6, %v1717_v42, -inf  ;;  %v1720_v40 = vsel %vm3532_vm4, %v1716_v27, -inf  ;;  %vm4962_vm6 = vmmov %vm4961_vm1  ;;  %v4963_v27 = vld [vmem:[#allocation6_spill] sm:$0xff]  ;;  %vm2664_vm4 = vcmask 523264  }
 0x6fd   : > { %v1753_v41 = vmax.f32 %v1751_v19, %v1709_v38  ;;  %v1754_v18 = vmax.f32 %v1752_v26, %v1720_v40  ;;  %v4969_v40 = vpack.c.bf16 %v4101_v15, %v4090_v60  ;;  %v4972_v26 = vld [vmem:[#allocation11_spill] sm:$0xff] }
 0x6fe   : > { %v1725_v21 = vpop.permute.xlu0 %1724  ;;  %v1727_v56 = vpop.permute.xlu1 %1726 }
 0x6ff   : > { %v1755_v22 = vmax.f32 %v1753_v41, %v1721_v34  ;;  %v1729_v28 = vsel %vm4961_vm1, %v1725_v21, %v1727_v56  ;;  %v4966_v34 = vld [vmem:[#allocation8_spill] sm:$0xff]  ;;  %v4968_v56 = vld [vmem:[#allocation9_spill] sm:$0xff] }
 0x700   : > { %v1733_v31 = vsel %vm3559_vm9, %v1729_v28, -inf  ;;  %v4971_v28 = vpack.c.bf16 %v4143_v6, %v4134_v43 }
 0x701   : > { %v1767_v48 = vmax.f32 %v1755_v22, %v1763_v10  ;;  %v4970_v22 = vld [vmem:[#allocation10_spill] sm:$0xff]  ;;  %v4973_v10 = vpack.c.bf16 %v4173_v23, %v4150_v9 }
 0x702   : > { %v1757_v35 = vpop.permute.xlu0 %1756  ;;  %v1723_v49 = vpop.permute.xlu1 %1722 }
 0x703   : > { %v1769_v33 = vmax.f32 %v1767_v48, %v1733_v31  ;;  %v1762_v59 = vsel %vm844_vm13, %v1757_v35, %v1759_v39  ;;  %v1728_v57 = vsel %vm4962_vm6, %v1723_v49, %v1725_v21  ;;  %v4967_v21 = vpack.c.bf16 %v4078_v8, %v4066_v4  ;;  %v4974_v48 = vld [vmem:[#allocation12_spill] sm:$0xff]  ;;  %v4976_v31 = vld [vmem:[#allocation13_spill] sm:$0xff]  ;;  %v4978_v49 = vld [vmem:[#allocation15_spill] sm:$0xff] }
 0x704   : > { %v1766_v25 = vmax.f32 %v1754_v18, %v1762_v59  ;;  %v1732_v1 = vsel %vm3547_vm8, %v1728_v57, -inf  ;;  %v4975_v18 = vpack.c.bf16 %v4233_v32, %v4225_v30  ;;  %v4977_v35 = vpack.c.bf16 %v4263_v44, %v4258_v24 }
 0x705   : > { %v1898_v3 = vand.u32 4294901760, %v1769_v33  ;;  %v4980_v59 = vpack.c.bf16 %v4356_v61, %v4346_v16  ;;  %v4981_v57 = vpack.c.bf16 %v4390_v5, %v4383_v17 }
 0x706   : > { %v1768_v58 = vmax.f32 %v1766_v25, %v1732_v1  ;;  %v4982_v25 = vpack.c.bf16 %v4433_v7, %v4417_v63  ;;  %v4983_v1 = vpack.c.bf16 %v4462_v54, %v4456_v36 }
 0x707   : > { %v1899_v62 = vsub.f32 %v1769_v33, %v1898_v3  ;;  %2139 = vmatprep.mubr.f32.mxu0 %v1898_v3  ;;  %v4979_v33 = vpack.c.bf16 %v4304_v2, %v4293_v0 }
 0x708   : > { %v4631_v45 = vand.u32 4294901760, %v1768_v58 }
 0x709   : > { %v1900_v19 = vand.u32 4294901760, %v1899_v62 }
 0x70a   : > { %v1905_v47 = vsub.f32 %v1768_v58, %v4631_v45  ;;  %2141 = vmatmul.mubr.f32.vlgmr.msra.gmra.mrb[8].mxu0 %v4631_v45  ;;  %v4984_v58 = vld [vmem:[#allocation14_spill] sm:$0xff] }
 0x70b   : > { %3129 = vmatpush3.bf16.msra.mxu0 %v4219_v29  ;;  %2383 = vmatprep.mubr.f32.mxu0 %v1900_v19  ;;  %v1901_v39 = vsub.f32 %v1899_v62, %v1900_v19  ;;  %v4986_v19 = vld [vmem:[#allocation17_spill] sm:$0xff] }
 0x70c   : > { %3131 = vmatprep.subr.bf16.mxu0 %v4252_v13  ;;  %v1906_v42 = vand.u32 4294901760, %v1905_v47 }
 0x70d   : > { %v1902_v37 = vand.u32 4294901760, %v1901_v39  ;;  %v4987_v39 = vld [vmem:[#allocation16_spill] sm:$0xff] }
 0x70e   : > { %v1907_v38 = vsub.f32 %v1905_v47, %v1906_v42 }
 0x70f   : > { %3133 = vmatpush3.bf16.msra.mxu0 %v4963_v27  ;;  %1903 = vmatprep.mubr.f32.mxu1 %v1902_v37  ;;  %v4988_v37 = vpack.c.bf16 %v4986_v19, %v4987_v39 }
 0x710   : > { %3135 = vmatprep.subr.bf16.mxu0 %v4964_v53  ;;  %v1908_v41 = vand.u32 4294901760, %v1907_v38  ;;  %v4989_v38 = vld [vmem:[#allocation4_spill] sm:$0xff] }
 0x712   : > { %1909 = vmatmul.mubr.f32.vlgmr.msra.gmra.mrb[12].mxu1 %v1908_v41  ;;  %v4990_v41 = vand.u32 4294901760, %v4989_v38 }
 0x713   : > { %3097 = vmatpush3.bf16.msra.mxu1 %v4965_v50  ;;  %3137 = vmatpush3.bf16.msra.mxu0 %v4966_v34  ;;  %v4991_v50 = vld [vmem:[#allocation5_spill] sm:$0xff] }
 0x714   : > { %2276 = vmatprep.mubr.f32.mxu1 %v1899_v62  ;;  %3099 = vmatprep.subr.bf16.mxu1 %v4967_v21  ;;  %v4985_v62 = vpack.c.bf16 %v4489_v11, %v4984_v58  ;;  %v4992_v21 = vand.u32 4294901760, %v4991_v50 }
 0x715   : > { %3139 = vmatprep.subr.bf16.mxu0 %v4968_v56 }
 0x717   : > { %3101 = vmatpush3.bf16.msra.mxu1 %v4969_v40  ;;  %3141 = vmatpush3.bf16.msra.mxu0 %v4970_v22  ;;  %v3158_v40 = vpack.c.bf16 %v4992_v21, %v4990_v41 }
 0x718   : > { %3103 = vmatprep.subr.bf16.mxu1 %v4971_v28  ;;  %3143 = vmatprep.subr.bf16.mxu0 %v4972_v26 }
 0x71b   : > { %3105 = vmatpush3.bf16.msra.mxu1 %v4973_v10  ;;  %3145 = vmatpush3.bf16.msra.mxu0 %v4974_v48  ;;  %v4997_v10 = vand.u32 4294901760, %v4029_v52  ;;  %v5003_v52 = vand.u32 4294901760, %v4143_v6  ;;  %v5009_v6 = vand.u32 4294901760, %v4263_v44  ;;  %v5015_v44 = vand.u32 4294901760, %v4390_v5 }
 0x71c   : > { %3107 = vmatprep.subr.bf16.mxu1 %v4975_v18  ;;  %3147 = vmatprep.subr.bf16.mxu0 %v4976_v31  ;;  %v5021_v5 = vand.u32 4294901760, %v4489_v11 }
 0x71f   : > { %3109 = vmatpush3.bf16.msra.mxu1 %v4977_v35  ;;  %3149 = vmatpush3.bf16.msra.mxu0 %v4978_v49  ;;  %v4998_v35 = vand.u32 4294901760, %v4066_v4  ;;  %v5004_v4 = vand.u32 4294901760, %v4150_v9  ;;  %v5010_v9 = vand.u32 4294901760, %v4293_v0  ;;  %v5016_v0 = vand.u32 4294901760, %v4417_v63  ;;  %v5022_v63 = vld [vmem:[#allocation20_spill] sm:$0xff] }
 0x720   : > { %3111 = vmatprep.subr.bf16.mxu1 %v4979_v33  ;;  %3151 = vmatprep.subr.bf16.mxu0 %v4521_v14  ;;  %v4999_v33 = vand.u32 4294901760, %v4078_v8  ;;  %v5005_v8 = vand.u32 4294901760, %v4173_v23  ;;  %v5011_v23 = vand.u32 4294901760, %v4304_v2  ;;  %v5017_v2 = vand.u32 4294901760, %v4433_v7 }
 0x723   : > { %3113 = vmatpush3.bf16.msra.mxu1 %v4980_v59  ;;  %3153 = vmatpush3.bf16.msra.mxu0 %v4533_v12  ;;  %v3162_v59 = vpack.c.bf16 %v4999_v33, %v4998_v35 }
 0x724   : > { %3115 = vmatprep.subr.bf16.mxu1 %v4981_v57  ;;  %3155 = vmatprep.subr.bf16.mxu0 %v4538_v55 }
 0x727   : > { %3117 = vmatpush3.bf16.msra.mxu1 %v4982_v25  ;;  %3157 = vmatpush3.bf16.msra.mxu0 %v4542_v20 }
 0x728   : > { %3119 = vmatprep.subr.bf16.mxu1 %v4983_v1  ;;  %3191 = vmatprep.subr.bf16.mxu0 %v4199_v46  ;;  %v4993_v46 = vld [vmem:[#allocation19_spill] sm:$0xff] }
 0x72a   : > { %2387 = vmatmul.mubr.f32.vlgmr.msra.gmra.mrb[10].mxu0 %v1906_v42  ;;  %v4994_v42 = vld [vmem:[#allocation18_spill] sm:$0xff] }
 0x72b   : > { %3121 = vmatpush3.bf16.msra.mxu1 %v4985_v62  ;;  %3193 = vmatpush3.bf16.msra.mxu0 %v4219_v29  ;;  %v4995_v28 = vpack.c.bf16 %v4993_v46, %v4994_v42  ;;  %v4996_v29 = vand.u32 4294901760, %v4024_v51  ;;  %v5002_v51 = vand.u32 4294901760, %v4134_v43  ;;  %v5008_v43 = vand.u32 4294901760, %v4258_v24 }
 0x72c   : > { %2657 = vmatprep.mubr.f32.mxu0 %v1898_v3  ;;  %3123 = vmatprep.subr.bf16.mxu1 %v4988_v37  ;;  %v5014_v24 = vand.u32 4294901760, %v4383_v17  ;;  %v5020_v17 = vand.u32 4294901760, %v4984_v58 }
 0x72d   : > { %3195 = vmatprep.subr.bf16.mxu0 %v4252_v13  ;;  %v3160_v18 = vpack.c.bf16 %v4997_v10, %v4996_v29  ;;  %v5000_v13 = vand.u32 4294901760, %v4090_v60  ;;  %v5006_v60 = vand.u32 4294901760, %v4225_v30  ;;  %v5012_v30 = vand.u32 4294901760, %v4346_v16 }
 0x72e   : > { %v5018_v16 = vand.u32 4294901760, %v4456_v36  ;;  %v5023_v36 = vld [vmem:[#allocation21_spill] sm:$0xff] }
 0x72f   : > { %3125 = vmatpush3.bf16.msra.mxu1 %v4995_v28  ;;  %3197 = vmatpush3.bf16.msra.mxu0 %v4963_v27  ;;  %v5001_v27 = vand.u32 4294901760, %v4101_v15  ;;  %v5007_v15 = vand.u32 4294901760, %v4233_v32  ;;  %v5013_v32 = vand.u32 4294901760, %v4356_v61  ;;  %v5019_v61 = vand.u32 4294901760, %v4462_v54 }
 0x730   : > { %3159 = vmatprep.subr.bf16.mxu1 %v3158_v40  ;;  %3199 = vmatprep.subr.bf16.mxu0 %v4964_v53  ;;  %v3166_v53 = vpack.c.bf16 %v5003_v52, %v5002_v51 }
 0x731   : > { %v3164_v57 = vpack.c.bf16 %v5001_v27, %v5000_v13 }
 0x732   : > { %2279 = vmatmul.mubr.f32.vlgmr.msra.gmra.mrb[14].mxu1 %v1905_v47  ;;  %v3170_v47 = vpack.c.bf16 %v5007_v15, %v5006_v60 }
 0x733   : > { %3161 = vmatpush3.bf16.msra.mxu1 %v3160_v18  ;;  %2553 = vmatprep.mubr.f32.mxu1 %v1898_v3  ;;  %v3168_v3 = vpack.c.bf16 %v5005_v8, %v5004_v4 }
 0x734   : > { %3201 = vmatpush3.bf16.msra.mxu0 %v4966_v34  ;;  %3163 = vmatprep.subr.bf16.mxu1 %v3162_v59  ;;  %v3172_v34 = vpack.c.bf16 %v5009_v6, %v5008_v43 }
 0x735   : > { %3203 = vmatprep.subr.bf16.mxu0 %v4968_v56  ;;  %v3174_v56 = vpack.c.bf16 %v5011_v23, %v5010_v9 }
 0x737   : > { %3165 = vmatpush3.bf16.msra.mxu1 %v3164_v57 }
 0x738   : > { %3205 = vmatpush3.bf16.msra.mxu0 %v4970_v22  ;;  %3167 = vmatprep.subr.bf16.mxu1 %v3166_v53  ;;  %v3176_v22 = vpack.c.bf16 %v5013_v32, %v5012_v30 }
 0x739   : > { %3207 = vmatprep.subr.bf16.mxu0 %v4972_v26  ;;  %v3178_v26 = vpack.c.bf16 %v5015_v44, %v5014_v24 }
 0x73b   : > { %3169 = vmatpush3.bf16.msra.mxu1 %v3168_v3 }
 0x73c   : > { %3209 = vmatpush3.bf16.msra.mxu0 %v4974_v48  ;;  %3171 = vmatprep.subr.bf16.mxu1 %v3170_v47  ;;  %v3180_v48 = vpack.c.bf16 %v5017_v2, %v5016_v0 }
 0x73d   : > { %3211 = vmatprep.subr.bf16.mxu0 %v4976_v31  ;;  %v3182_v31 = vpack.c.bf16 %v5019_v61, %v5018_v16 }
 0x73f   : > { %3173 = vmatpush3.bf16.msra.mxu1 %v3172_v34 }
 0x740   : > { %3213 = vmatpush3.bf16.msra.mxu0 %v4978_v49  ;;  %3175 = vmatprep.subr.bf16.mxu1 %v3174_v56 }
 0x741   : > { %3215 = vmatprep.subr.bf16.mxu0 %v4521_v14  ;;  %v3184_v14 = vpack.c.bf16 %v5021_v5, %v5020_v17 }
 0x743   : > { %3177 = vmatpush3.bf16.msra.mxu1 %v3176_v22 }
 0x744   : > { %3217 = vmatpush3.bf16.msra.mxu0 %v4533_v12  ;;  %3179 = vmatprep.subr.bf16.mxu1 %v3178_v26 }
 0x745   : > { %3219 = vmatprep.subr.bf16.mxu0 %v4538_v55 }
 0x747   : > { %3181 = vmatpush3.bf16.msra.mxu1 %v3180_v48 }
 0x748   : > { %3221 = vmatpush3.bf16.msra.mxu0 %v4542_v20  ;;  %3183 = vmatprep.subr.bf16.mxu1 %v3182_v31 }
 0x74b   : > { %2659 = vmatmul.mubr.f32.vlgmr.msra.gmra.mrb[12].mxu0 %v4631_v45  ;;  %3185 = vmatpush3.bf16.msra.mxu1 %v3184_v14 }
 0x74c   : > { %3187 = vmatprep.subr.bf16.mxu1 %v5022_v63 }
 0x74f   : > { %3189 = vmatpush3.bf16.msra.mxu1 %v5023_v36 }
 0x752   : > { %2555 = vmatmul.mubr.f32.vlgmr.msra.gmra.mrb[16].mxu1 %v4631_v45 }
 0x7dd   : > { %v2887_v7 = vpop.f32.mrb[8].mxu0 }
 0x7de   : > { %v2888_v54 = vpop.f32.mrb[9].mxu0 }
 0x7df   : > { %v2889_v12 = vadd.f32 %v2888_v54, %v2887_v7 }
 0x7e5   : > { %v2852_v55 = vpop.f32.mrb[12].mxu1 }
 0x7e6   : > { %v2853_v49 = vpop.f32.mrb[13].mxu1 }
 0x7e7   : > { %v2854_v25 = vadd.f32 %v2853_v49, %v2852_v55 }
 0x7e9   : > { %v2143_v11 = vadd.f32 %v2889_v12, %v2854_v25 }
 0x7fd   : > { %v2957_v1 = vpop.f32.mrb[10].mxu0 }
 0x7fe   : > { %v2958_v20 = vpop.f32.mrb[11].mxu0 }
 0x7ff   : > { %v2959_v58 = vadd.f32 %v2958_v20, %v2957_v1 }
 0x805   : > { %v2922_v62 = vpop.f32.mrb[14].mxu1 }
 0x806   : > { %v2923_v19 = vpop.f32.mrb[15].mxu1 }
 0x807   : > { %v2924_v39 = vadd.f32 %v2923_v19, %v2922_v62 }
 0x809   : > { %v2281_v37 = vadd.f32 %v2924_v39, %v2143_v11 }
 0x80b   : > { %v2389_v38 = vadd.f32 %v2959_v58, %v2281_v37 }
 0x81e   : > { %v3027_v41 = vpop.f32.mrb[12].mxu0 }
 0x81f   : > { %v3028_v50 = vpop.f32.mrb[13].mxu0 }
 0x820   : > { %v3029_v21 = vadd.f32 %v3028_v50, %v3027_v41 }
 0x825   : > { %v2992_v45 = vpop.f32.mrb[16].mxu1 }
 0x826   : > { %v2993_v40 = vpop.f32.mrb[17].mxu1 }
 0x827   : > { %v2994_v46 = vadd.f32 %v2993_v40, %v2992_v45 }
 0x829   : > { %v2557_v42 = vadd.f32 %v2994_v46, %v2389_v38 }
 0x82b   : > { %v2661_v28 = vadd.f32 %v3029_v21, %v2557_v42 }
 0x82d   : > { %2665 = vst.msk [vmem:[%s598_s23] sm:$0xff] %vm2664_vm4, %v2661_v28 }
 0x82e PF: > { %s29_s27 = sadd.s32 1, %s3354_s27  }
 0x82f   : > { %p26_p4 = scmp.ge.s32.totalorder %s29_s27, 4  }
 0x831   :  { %28 = sbr.rel (!%p26_p4) target bundleno = 4 (0x4), region = 138 }

</bundles_post_ra>
